<compile_context>
chip_gen: v6e
topology: v6e:2x2x1
jax: 0.10.0
libtpu: 0.0.40
codegen_flags: <defaults>
</compile_context>

<pallas_src>
import functools

import numpy as np
import jax
import jax.numpy as jnp
from jax.experimental import pallas as pl
from jax.experimental.pallas import tpu as pltpu


# ------------------------------ configuration --------------------------------
IN_DIM = 32            # stand-in for 2048
RED = 32               # stand-in for 512 (reduction_dim); 4 branches -> 128 lanes
SETTING = (1, 2, 3, 6)
SPATIAL = 16           # D = H = W
BATCH = 2
BN_EPS = 1e-5
NEG_MASK = -1e30       # finite "minus infinity" folded into the bias; ReLU -> exact 0


def _round_up(v, m):
    return (v + m - 1) // m * m


# -------------------- host-side pooling / upsampling matrices ----------------

def adaptive_pool_matrix(in_size, out_size):
    """Row-stochastic matrix reproducing nn.AdaptiveAvgPool along one axis."""
    M = np.zeros((out_size, in_size), np.float32)
    for i in range(out_size):
        start = (i * in_size) // out_size
        end = -((-(i + 1) * in_size) // out_size)  # ceil((i+1)*in/out)
        M[i, start:end] = 1.0 / (end - start)
    return M


def linear_interp_matrix(in_size, out_size, align_corners=False):
    """Trilinear upsample weights along one axis (align_corners=False = modern default)."""
    M = np.zeros((out_size, in_size), np.float32)
    if align_corners and out_size > 1:
        src = np.arange(out_size, dtype=np.float64) * (in_size - 1) / max(out_size - 1, 1)
    else:
        scale = in_size / out_size
        src = (np.arange(out_size, dtype=np.float64) + 0.5) * scale - 0.5
    src = np.clip(src, 0.0, in_size - 1)
    lo = np.floor(src).astype(np.int64)
    hi = np.minimum(lo + 1, in_size - 1)
    w_hi = (src - lo).astype(np.float32)
    M[np.arange(out_size), lo] += 1.0 - w_hi
    M[np.arange(out_size), hi] += w_hi
    return M


def build_constants(D, H, W, setting, red):
    """Static Kronecker pool/upsample matrices, branch mask, padded sizes."""
    per_branch, p_rows, u_cols = [], [], []
    for s in setting:
        Pb = np.kron(adaptive_pool_matrix(D, s),
                     np.kron(adaptive_pool_matrix(H, s),
                             adaptive_pool_matrix(W, s)))          # (s^3, DHW)
        Ub = np.kron(linear_interp_matrix(s, D),
                     np.kron(linear_interp_matrix(s, H),
                             linear_interp_matrix(s, W)))          # (DHW, s^3)
        per_branch.append((Pb, Ub))
        p_rows.append(Pb)
        u_cols.append(Ub)

    S = sum(s ** 3 for s in setting)
    S_pad = _round_up(S, 16)                # bf16 sublane-packing friendly
    Cr = len(setting) * red
    Cr_pad = _round_up(Cr, 128)             # lane-dense conv-output width
    DHW = D * H * W

    P = np.zeros((S_pad, DHW), np.float32)
    P[:S] = np.concatenate(p_rows, axis=0)
    U = np.zeros((DHW, S_pad), np.float32)
    U[:, :S] = np.concatenate(u_cols, axis=1)

    # maskT[ch, s] = 1 iff pooled row s belongs to the same branch as output channel ch.
    maskT = np.zeros((Cr_pad, S_pad), np.float32)
    off = 0
    for b, s in enumerate(setting):
        maskT[b * red:(b + 1) * red, off:off + s ** 3] = 1.0
        off += s ** 3

    return dict(per_branch=per_branch,
                PT=np.ascontiguousarray(P.T),      # (DHW, S_pad)  pooling, transposed
                UT=np.ascontiguousarray(U.T),      # (S_pad, DHW)  upsample, transposed
                maskT=maskT,
                S_pad=S_pad, Cr=Cr, Cr_pad=Cr_pad)


def fold_bn_params(params, consts):
    """Fold eval-mode BN into the concatenated 1x1x1 conv weight & bias, and fold the
    branch/padding mask into the bias (NEG_MASK at masked positions; ReLU zeroes them).
    Call OUTSIDE the jitted forward (review item: keep HLO around the kernel clean)."""
    ws, bs = [], []
    for br in params["branches"]:
        scale = br["gamma"] / jnp.sqrt(br["var"] + BN_EPS)
        ws.append(br["w"] * scale[None, :])            # (C, red)
        bs.append(br["beta"] - br["mean"] * scale)     # (red,)
    Cr, Cr_pad = consts["Cr"], consts["Cr_pad"]
    w_cat = jnp.pad(jnp.concatenate(ws, axis=1), ((0, 0), (0, Cr_pad - Cr)))
    b_cat = jnp.pad(jnp.concatenate(bs, axis=0), (0, Cr_pad - Cr))
    maskT = jnp.asarray(consts["maskT"])               # (Cr_pad, S_pad)
    bias_masked = jnp.where(maskT > 0, b_cat[:, None], jnp.float32(NEG_MASK))
    return dict(wT=w_cat.T.astype(jnp.bfloat16),       # (Cr_pad, C)
                bias=bias_masked.astype(jnp.float32))  # (Cr_pad, S_pad)


# ------------------------------- Pallas kernels --------------------------------

def _pool_conv_kernel(x_ref, pT_ref, wT_ref, bias_ref, r_ref, acc_ref):
    """Kernel A: accumulate pooled^T over DHW tiles, then BN-folded conv + masked bias + ReLU.

    x_ref    (C, TK)         bf16   one DHW tile of one batch element (channel-first)
    pT_ref   (TK, S_pad)     bf16   pooling Kronecker matrix tile (transposed)
    wT_ref   (Cr_pad, C)     bf16   BN-folded conv weight^T            (grid-invariant)
    bias_ref (Cr_pad, S_pad) f32    BN-folded bias with mask folded in (grid-invariant)
    r_ref    (Cr_pad, S_pad) bf16   output: relu(conv(pool(x)))^T
    acc_ref  (C, S_pad)      f32    pooled^T accumulator
    """
    k = pl.program_id(1)

    @pl.when(k == 0)
    def _():
        acc_ref[...] = jnp.zeros_like(acc_ref)

    acc_ref[...] += jnp.dot(x_ref[...], pT_ref[...],
                            preferred_element_type=jnp.float32)

    @pl.when(k == pl.num_programs(1) - 1)
    def _():
        r = jnp.dot(wT_ref[...], acc_ref[...].astype(jnp.bfloat16),
                    preferred_element_type=jnp.float32)
        r_ref[...] = jnp.maximum(r + bias_ref[...], 0.0).astype(r_ref.dtype)


def _upsample_concat_kernel(x_ref, r_ref, uT_ref, o_ref, *, n_in):
    """Kernel B: trilinear upsample of all branches (one MXU matmul) + x passthrough.

    x_ref  (C, TM)          bf16
    r_ref  (Cr_pad, S_pad)  bf16
    uT_ref (S_pad, TM)      bf16
    o_ref  (C+Cr_pad, TM)   bf16   rows [0,C)=x, rows [C,C+Cr_pad)=upsampled branches
    """
    up = jnp.dot(r_ref[...], uT_ref[...], preferred_element_type=jnp.float32)
    o_ref[:n_in, :] = x_ref[...].astype(o_ref.dtype)
    o_ref[n_in:, :] = up.astype(o_ref.dtype)


# ------------------------------- module forward -------------------------------

def feature_pyramid_forward(folded, x_ncdhw, consts, *, tile_k=512, tile_m=512):
    """x_ncdhw: (N, C, D, H, W) f32 -> (N, C + len(setting)*red, D, H, W) bf16."""
    N, C, D, H, W = x_ncdhw.shape
    M = D * H * W
    S_pad, Cr, Cr_pad = consts["S_pad"], consts["Cr"], consts["Cr_pad"]

    TK = tile_k if M % tile_k == 0 else M
    TM = tile_m if M % tile_m == 0 else M

    x_cf = x_ncdhw.reshape(N, C, M).astype(jnp.bfloat16)     # channel-first; no transpose
    pT = jnp.asarray(consts["PT"], jnp.bfloat16)             # (M, S_pad)
    uT = jnp.asarray(consts["UT"], jnp.bfloat16)             # (S_pad, M)

    # ---- Kernel A: r^T = relu(W^T @ (x @ P^T) + masked bias), DHW contraction on grid.
    r = pl.pallas_call(
        _pool_conv_kernel,
        out_shape=jax.ShapeDtypeStruct((N, Cr_pad, S_pad), jnp.bfloat16),
        grid=(N, M // TK),
        in_specs=[
            pl.BlockSpec((None, C, TK), lambda n, k: (n, 0, k)),
            pl.BlockSpec((TK, S_pad), lambda n, k: (k, 0)),
            pl.BlockSpec((Cr_pad, C), lambda n, k: (0, 0),
                         pipeline_mode=pl.Buffered(1)),            # grid-invariant
            pl.BlockSpec((Cr_pad, S_pad), lambda n, k: (0, 0),
                         pipeline_mode=pl.Buffered(1)),            # grid-invariant
        ],
        out_specs=pl.BlockSpec((None, Cr_pad, S_pad), lambda n, k: (n, 0, 0)),
        scratch_shapes=[pltpu.VMEM((C, S_pad), jnp.float32)],
        compiler_params=pltpu.CompilerParams(
            dimension_semantics=("parallel", "arbitrary")),
    )(x_cf, pT, folded["wT"], folded["bias"])

    # ---- Kernel B: up^T = r^T @ U^T, tiled over DHW rows; x passthrough fused in.
    out_cf = pl.pallas_call(
        functools.partial(_upsample_concat_kernel, n_in=C),
        out_shape=jax.ShapeDtypeStruct((N, C + Cr_pad, M), jnp.bfloat16),
        grid=(N, M // TM),
        in_specs=[
            pl.BlockSpec((None, C, TM), lambda n, m: (n, 0, m)),
            pl.BlockSpec((None, Cr_pad, S_pad), lambda n, m: (n, 0, 0)),
            pl.BlockSpec((S_pad, TM), lambda n, m: (0, m)),
        ],
        out_specs=pl.BlockSpec((None, C + Cr_pad, TM), lambda n, m: (n, 0, m)),
        compiler_params=pltpu.CompilerParams(
            dimension_semantics=("parallel", "parallel")),
    )(x_cf, r, uT)

    # Cr == Cr_pad for the stand-in config, so the slice is a no-op; it only trims
    # padded channels when len(setting)*red is not a multiple of 128.
    return out_cf[:, :C + Cr].reshape(N, C + Cr, D, H, W)


# ------------------------------ pure-JAX reference ----------------------------

def ppm_reference(params, x_ncdhw, consts):
    """f32 reference of _FeaturePyramidModule.forward (eval mode)."""
    N, C, D, H, W = x_ncdhw.shape
    M = D * H * W
    hp = jax.lax.Precision.HIGHEST
    x_cl = jnp.transpose(x_ncdhw, (0, 2, 3, 4, 1)).reshape(N, M, C)
    outs = [x_cl]
    for (Pb, Ub), br in zip(consts["per_branch"], params["branches"]):
        pooled = jnp.einsum("sm,nmc->nsc", Pb, x_cl, precision=hp)
        scale = br["gamma"] / jnp.sqrt(br["var"] + BN_EPS)
        bias = br["beta"] - br["mean"] * scale
        r = jnp.einsum("nsc,cr->nsr", pooled, br["w"], precision=hp) * scale + bias
        r = jnp.maximum(r, 0.0)
        outs.append(jnp.einsum("ms,nsr->nmr", Ub, r, precision=hp))
    out_cl = jnp.concatenate(outs, axis=-1)
    return out_cl.reshape(N, D, H, W, -1).transpose(0, 4, 1, 2, 3)


# ---------------------------------- params ------------------------------------

def init_params(key):
    branches = []
    for b in range(len(SETTING)):
        k = jax.random.fold_in(key, b)
        w = jax.random.normal(k, (IN_DIM, RED), jnp.float32) * np.sqrt(2.0 / IN_DIM)
        branches.append(dict(
            w=w,                                          # Conv3d(in, red, 1, bias=False)
            gamma=jnp.ones((RED,), jnp.float32),          # BN eval-mode defaults
            beta=jnp.zeros((RED,), jnp.float32),
            mean=jnp.zeros((RED,), jnp.float32),
            var=jnp.ones((RED,), jnp.float32),
        ))
    return {"branches": branches}


# ----------------------------------- main --------------------------------------

if __name__ == "__main__":
    key = jax.random.PRNGKey(0)
    k_param, k_x = jax.random.split(key)

    params = init_params(k_param)
    x = jax.random.normal(k_x, (BATCH, IN_DIM, SPATIAL, SPATIAL, SPATIAL), jnp.float32)

    consts = build_constants(SPATIAL, SPATIAL, SPATIAL, SETTING, RED)
    folded = fold_bn_params(params, consts)                 # BN folding outside jit

    forward = jax.jit(functools.partial(feature_pyramid_forward, consts=consts))
    out = jax.block_until_ready(forward(folded, x))

    expected_c = IN_DIM + len(SETTING) * RED
    assert out.shape == (BATCH, expected_c, SPATIAL, SPATIAL, SPATIAL), out.shape

    out_f32 = np.asarray(out.astype(jnp.float32))
    assert np.all(np.isfinite(out_f32))

    ref = np.asarray(jax.block_until_ready(ppm_reference(params, x, consts)))
    np.testing.assert_allclose(out_f32, ref, rtol=3e-2, atol=3e-2)

    print("KERNEL_OK")
</pallas_src>

<mosaic_0001>
module attributes {stable_mosaic.version = 11 : i64} {
  func.func @_pool_conv_kernel(%arg0: i32, %arg1: i32, %arg2: memref<1x32x512xbf16, #tpu.memory_space<vmem>>, %arg3: memref<512x256xbf16, #tpu.memory_space<vmem>>, %arg4: memref<128x32xbf16, #tpu.memory_space<vmem>>, %arg5: memref<128x256xf32, #tpu.memory_space<vmem>>, %arg6: memref<1x128x256xbf16, #tpu.memory_space<vmem>>, %arg7: memref<32x256xf32, #tpu.memory_space<vmem>>) attributes {dimension_semantics = [#tpu.dimension_semantics<parallel>, #tpu.dimension_semantics<arbitrary>], iteration_bounds = array<i64: 2, 8>, scalar_prefetch = 0 : i64, scratch_operands = 1 : i64, tpu.core_type = #tpu.core_type<tc>, window_params = [{transform_indices = @transform_0, window_bounds = array<i64: 1, 32, 512>}, {transform_indices = @transform_1, window_bounds = array<i64: 512, 256>}, {pipeline_mode = #tpu.pipeline_mode<synchronous>, transform_indices = @transform_2, window_bounds = array<i64: 128, 32>}, {pipeline_mode = #tpu.pipeline_mode<synchronous>, transform_indices = @transform_3, window_bounds = array<i64: 128, 256>}, {transform_indices = @transform_4, window_bounds = array<i64: 1, 128, 256>}]} {
    %c0_i32 = arith.constant 0 : i32
    %0 = arith.cmpi eq, %arg1, %c0_i32 : i32
    %1 = arith.extui %0 : i1 to i32
    %c0_i32_0 = arith.constant 0 : i32
    %2 = arith.cmpi ne, %1, %c0_i32_0 : i32
    scf.if %2 {
      %cst_10 = arith.constant 0.000000e+00 : f32
      %13 = vector.broadcast %cst_10 : f32 to vector<32x256xf32>
      %c0_11 = arith.constant 0 : index
      %c0_12 = arith.constant 0 : index
      %14 = vector.load %arg7[%c0_11, %c0_12] : memref<32x256xf32, #tpu.memory_space<vmem>>, vector<32x256xf32>
      tpu.vector_store %arg7[%c0_11, %c0_12], %13 {strides = array<i32>} : memref<32x256xf32, #tpu.memory_space<vmem>>, vector<32x256xf32>,
    } else {
    }
    %c0 = arith.constant 0 : index
    %c0_1 = arith.constant 0 : index
    %3 = vector.load %arg7[%c0, %c0_1] : memref<32x256xf32, #tpu.memory_space<vmem>>, vector<32x256xf32>
    %c0_2 = arith.constant 0 : index
    %c0_3 = arith.constant 0 : index
    %c0_4 = arith.constant 0 : index
    %4 = vector.load %arg2[%c0_2, %c0_3, %c0_4] : memref<1x32x512xbf16, #tpu.memory_space<vmem>>, vector<1x32x512xbf16>
    %5 = vector.shape_cast %4 : vector<1x32x512xbf16> to vector<32x512xbf16>
    %c0_5 = arith.constant 0 : index
    %c0_6 = arith.constant 0 : index
    %6 = vector.load %arg3[%c0_5, %c0_6] : memref<512x256xbf16, #tpu.memory_space<vmem>>, vector<512x256xbf16>
    %cst = arith.constant dense<0.000000e+00> : vector<32x256xf32>
    %7 = tpu.matmul %5, %6, %cst {dimension_numbers = #tpu.dot_dimension_numbers<[1], [0], [0], [1], [0, 0, 1, 1], [], []>} : vector<32x512xbf16>, vector<512x256xbf16>, vector<32x256xf32> -> vector<32x256xf32>
    %8 = arith.addf %3, %7 : vector<32x256xf32>
    %c0_7 = arith.constant 0 : index
    %c0_8 = arith.constant 0 : index
    %9 = vector.load %arg7[%c0_7, %c0_8] : memref<32x256xf32, #tpu.memory_space<vmem>>, vector<32x256xf32>
    tpu.vector_store %arg7[%c0_7, %c0_8], %8 {strides = array<i32>} : memref<32x256xf32, #tpu.memory_space<vmem>>, vector<32x256xf32>,
    %c7_i32 = arith.constant 7 : i32
    %10 = arith.cmpi eq, %arg1, %c7_i32 : i32
    %11 = arith.extui %10 : i1 to i32
    %c0_i32_9 = arith.constant 0 : i32
    %12 = arith.cmpi ne, %11, %c0_i32_9 : i32
    scf.if %12 {
      %c0_10 = arith.constant 0 : index
      %c0_11 = arith.constant 0 : index
      %13 = vector.load %arg4[%c0_10, %c0_11] : memref<128x32xbf16, #tpu.memory_space<vmem>>, vector<128x32xbf16>
      %c0_12 = arith.constant 0 : index
      %c0_13 = arith.constant 0 : index
      %14 = vector.load %arg7[%c0_12, %c0_13] : memref<32x256xf32, #tpu.memory_space<vmem>>, vector<32x256xf32>
      %15 = arith.truncf %14 : vector<32x256xf32> to vector<32x256xbf16>
      %cst_14 = arith.constant dense<0.000000e+00> : vector<128x256xf32>
      %16 = tpu.matmul %13, %15, %cst_14 {dimension_numbers = #tpu.dot_dimension_numbers<[1], [0], [0], [1], [0, 0, 1, 1], [], []>} : vector<128x32xbf16>, vector<32x256xbf16>, vector<128x256xf32> -> vector<128x256xf32>
      %c0_15 = arith.constant 0 : index
      %c0_16 = arith.constant 0 : index
      %17 = vector.load %arg5[%c0_15, %c0_16] : memref<128x256xf32, #tpu.memory_space<vmem>>, vector<128x256xf32>
      %18 = arith.addf %16, %17 : vector<128x256xf32>
      %cst_17 = arith.constant 0.000000e+00 : f32
      %19 = vector.broadcast %cst_17 : f32 to vector<128x256xf32>
      %20 = arith.maximumf %18, %19 : vector<128x256xf32>
      %21 = arith.truncf %20 : vector<128x256xf32> to vector<128x256xbf16>
      %c0_18 = arith.constant 0 : index
      %c0_19 = arith.constant 0 : index
      %c0_20 = arith.constant 0 : index
      %22 = vector.load %arg6[%c0_18, %c0_19, %c0_20] : memref<1x128x256xbf16, #tpu.memory_space<vmem>>, vector<1x128x256xbf16>
      %23 = vector.shape_cast %22 : vector<1x128x256xbf16> to vector<128x256xbf16>
      %24 = vector.shape_cast %21 : vector<128x256xbf16> to vector<1x128x256xbf16>
      tpu.vector_store %arg6[%c0_18, %c0_19, %c0_20], %24 {strides = array<i32>} : memref<1x128x256xbf16, #tpu.memory_space<vmem>>, vector<1x128x256xbf16>,
    } else {
    }
    return
  }
  func.func @transform_0(%arg0: i32, %arg1: i32) -> (i32, i32, i32) {
    %c0_i32 = arith.constant 0 : i32
    %c0_i32_0 = arith.constant 0 : i32
    return %arg0, %c0_i32, %arg1 : i32, i32, i32
  }
  func.func @transform_1(%arg0: i32, %arg1: i32) -> (i32, i32) {
    %c0_i32 = arith.constant 0 : i32
    %c0_i32_0 = arith.constant 0 : i32
    return %arg1, %c0_i32 : i32, i32
  }
  func.func @transform_2(%arg0: i32, %arg1: i32) -> (i32, i32) {
    %c0_i32 = arith.constant 0 : i32
    %c0_i32_0 = arith.constant 0 : i32
    %c0_i32_1 = arith.constant 0 : i32
    return %c0_i32, %c0_i32_0 : i32, i32
  }
  func.func @transform_3(%arg0: i32, %arg1: i32) -> (i32, i32) {
    %c0_i32 = arith.constant 0 : i32
    %c0_i32_0 = arith.constant 0 : i32
    %c0_i32_1 = arith.constant 0 : i32
    return %c0_i32, %c0_i32_0 : i32, i32
  }
  func.func @transform_4(%arg0: i32, %arg1: i32) -> (i32, i32, i32) {
    %c0_i32 = arith.constant 0 : i32
    %c0_i32_0 = arith.constant 0 : i32
    %c0_i32_1 = arith.constant 0 : i32
    return %arg0, %c0_i32, %c0_i32_0 : i32, i32, i32
  }
}

module attributes {stable_mosaic.version = 11 : i64} {
  func.func @_upsample_concat_kernel(%arg0: i32, %arg1: i32, %arg2: memref<1x32x512xbf16, #tpu.memory_space<vmem>>, %arg3: memref<1x128x256xbf16, #tpu.memory_space<vmem>>, %arg4: memref<256x512xbf16, #tpu.memory_space<vmem>>, %arg5: memref<1x160x512xbf16, #tpu.memory_space<vmem>>) attributes {dimension_semantics = [#tpu.dimension_semantics<parallel>, #tpu.dimension_semantics<parallel>], iteration_bounds = array<i64: 2, 8>, scalar_prefetch = 0 : i64, scratch_operands = 0 : i64, tpu.core_type = #tpu.core_type<tc>, window_params = [{transform_indices = @transform_0, window_bounds = array<i64: 1, 32, 512>}, {transform_indices = @transform_1, window_bounds = array<i64: 1, 128, 256>}, {transform_indices = @transform_2, window_bounds = array<i64: 256, 512>}, {transform_indices = @transform_3, window_bounds = array<i64: 1, 160, 512>}]} {
    %c0 = arith.constant 0 : index
    %c0_0 = arith.constant 0 : index
    %c0_1 = arith.constant 0 : index
    %0 = vector.load %arg3[%c0, %c0_0, %c0_1] : memref<1x128x256xbf16, #tpu.memory_space<vmem>>, vector<1x128x256xbf16>
    %1 = vector.shape_cast %0 : vector<1x128x256xbf16> to vector<128x256xbf16>
    %c0_2 = arith.constant 0 : index
    %c0_3 = arith.constant 0 : index
    %2 = vector.load %arg4[%c0_2, %c0_3] : memref<256x512xbf16, #tpu.memory_space<vmem>>, vector<256x512xbf16>
    %cst = arith.constant dense<0.000000e+00> : vector<128x512xf32>
    %3 = tpu.matmul %1, %2, %cst {dimension_numbers = #tpu.dot_dimension_numbers<[1], [0], [0], [1], [0, 0, 1, 1], [], []>} : vector<128x256xbf16>, vector<256x512xbf16>, vector<128x512xf32> -> vector<128x512xf32>
    %c0_4 = arith.constant 0 : index
    %c0_5 = arith.constant 0 : index
    %c0_6 = arith.constant 0 : index
    %4 = vector.load %arg2[%c0_4, %c0_5, %c0_6] : memref<1x32x512xbf16, #tpu.memory_space<vmem>>, vector<1x32x512xbf16>
    %5 = vector.shape_cast %4 : vector<1x32x512xbf16> to vector<32x512xbf16>
    %c0_7 = arith.constant 0 : index
    %c0_8 = arith.constant 0 : index
    %c0_9 = arith.constant 0 : index
    %6 = vector.load %arg5[%c0_7, %c0_8, %c0_9] : memref<1x160x512xbf16, #tpu.memory_space<vmem>>, vector<1x32x512xbf16>
    %7 = vector.shape_cast %6 : vector<1x32x512xbf16> to vector<32x512xbf16>
    %8 = vector.shape_cast %5 : vector<32x512xbf16> to vector<1x32x512xbf16>
    tpu.vector_store %arg5[%c0_7, %c0_8, %c0_9], %8 {strides = array<i32>} : memref<1x160x512xbf16, #tpu.memory_space<vmem>>, vector<1x32x512xbf16>,
    %9 = arith.truncf %3 : vector<128x512xf32> to vector<128x512xbf16>
    %c0_10 = arith.constant 0 : index
    %c32 = arith.constant 32 : index
    %c0_11 = arith.constant 0 : index
    %10 = vector.load %arg5[%c0_10, %c32, %c0_11] : memref<1x160x512xbf16, #tpu.memory_space<vmem>>, vector<1x128x512xbf16>
    %11 = vector.shape_cast %10 : vector<1x128x512xbf16> to vector<128x512xbf16>
    %12 = vector.shape_cast %9 : vector<128x512xbf16> to vector<1x128x512xbf16>
    tpu.vector_store %arg5[%c0_10, %c32, %c0_11], %12 {strides = array<i32>} : memref<1x160x512xbf16, #tpu.memory_space<vmem>>, vector<1x128x512xbf16>,
    return
  }
  func.func @transform_0(%arg0: i32, %arg1: i32) -> (i32, i32, i32) {
    %c0_i32 = arith.constant 0 : i32
    %c0_i32_0 = arith.constant 0 : i32
    return %arg0, %c0_i32, %arg1 : i32, i32, i32
  }
  func.func @transform_1(%arg0: i32, %arg1: i32) -> (i32, i32, i32) {
    %c0_i32 = arith.constant 0 : i32
    %c0_i32_0 = arith.constant 0 : i32
    %c0_i32_1 = arith.constant 0 : i32
    return %arg0, %c0_i32, %c0_i32_0 : i32, i32, i32
  }
  func.func @transform_2(%arg0: i32, %arg1: i32) -> (i32, i32) {
    %c0_i32 = arith.constant 0 : i32
    %c0_i32_0 = arith.constant 0 : i32
    return %c0_i32, %arg1 : i32, i32
  }
  func.func @transform_3(%arg0: i32, %arg1: i32) -> (i32, i32, i32) {
    %c0_i32 = arith.constant 0 : i32
    %c0_i32_0 = arith.constant 0 : i32
    return %arg0, %c0_i32, %arg1 : i32, i32, i32
  }
}

</mosaic_0001>

<bundles_post_ra>
// kernel: feature_pyramid_forward.2
= control target key start
LH: loop header
LB: loop body
LE: loop exit
PB: predicated region body
PF: predicated region fallthrough
CT: control target
= control target key end

     0   :  { %s1724_s15 = smov 0   ;;  %s1726_s16 = smov 0   ;;  %s2041_s0 = inlined_call_operand.vmem [shape: bf16[2,32,4096], index: 0, kind: input, shape index: {}]   ;;  %s2042_s1 = inlined_call_operand.vmem [shape: bf16[4096,256], index: 1, kind: input, shape index: {}]   ;;  %s2043_s2 = inlined_call_operand.vmem [shape: bf16[128,32], index: 2, kind: input, shape index: {}]   ;;  %s2044_s3 = inlined_call_operand.vmem [shape: f32[128,256], index: 3, kind: input, shape index: {}]   ;;  %s2045_s4 = inlined_call_operand.vmem [shape: bf16[2,128,256], index: 4, kind: output, shape index: {}]  }
   0x1   :  { %s1728_s17 = smov 0   ;;  %s1730_s18 = smov 0  }
   0x2   :  { %s1732_s19 = smov 0   ;;  %s1734_s20 = smov 0  }
   0x3   :  { %s1736_s21 = smov 0  }
   0x4 LB: > { %s23_s22 = sadd.s32 1, %s1687_s19  ;;  %s26_s23 = sadd.s32 1, %s1691_s20  ;;  %s1695_s21 = sphi %s1736_s21, %s14_s21   ;;  %s1691_s20 = sphi %s1734_s20, %s2051_s20   ;;  %s1687_s19 = sphi %s1732_s19, %s2050_s19   ;;  %s1683_s18 = sphi %s1730_s18, %s2049_s18   ;;  %s1679_s17 = sphi %s1728_s17, %s2048_s17   ;;  %s1675_s16 = sphi %s1726_s16, %s2047_s16   ;;  %s1671_s15 = sphi %s1724_s15, %s2046_s15  }
   0x5   : > { %p24_p0 = scmp.ge.s32.totalorder %s23_s22, 8  ;;  %p42_p1 = scmp.ne.s32.totalorder %s1675_s16, %s1671_s15 }
   0x6   : > { %p43_p2 = scmp.eq.s32.totalorder %s1695_s21, 0  ;;  %s35_s27 = sadd.s32 1, %s1675_s16 }
   0x7   : > { %s2053_s22 = smov (%p24_p0, %s23_s22), 0  ;;  %s2055_s23 = smov (!%p24_p0, %s26_s23), %s1691_s20 }
   0x8   : > { %p44_p3 = por %p43_p2, %p42_p1  ;;  %p28_p4 = scmp.ge.s32.totalorder %s2055_s23, 2 }
   0x9   : > { %s31_s24 = ssub.s32 %s1687_s19, %s2053_s22  ;;  %p1325_p6 = scmp.ge.s32.totalorder %s1695_s21, 16 }
   0xa   : > { %s2057_s23 = smov (%p28_p4, %s2055_s23), 0 }
   0xb   : > { %s30_s25 = ssub.s32 %s1691_s20, %s2057_s23  ;;  %168 = sbr.rel (%p1325_p6) target bundleno = 27 (0x1b), region = 24 }
   0xc   : > { %s32_s26 = sor.u32 %s31_s24, %s30_s25 }
   0xd   : > { %p33_p5 = scmp.eq.s32.totalorder %s32_s26, 0 }
   0xf   : > { %s1775_s28 = scalar_select %p33_p5, %s1675_s16, %s35_s27  }
  0x10   : > { %171 = sbr.rel (!%p44_p3) target bundleno = 27 (0x1b), region = 28  ;;  %s173_s29 = sand.u32 (%p44_p3), 1, %s1675_s16  }
  0x11   : > { %s1327_s30 = sshll.u32 (%p44_p3), %s1687_s19, 2  ;;  %s1326_s5 = sshll.u32 (%p44_p3), %s173_s29, 6 }
  0x12   : > { %s1328_s6 = sshll.u32 (%p44_p3), %s1691_s20, 7  ;;  %s175_s12 = scalar_lea.vmem (%p44_p3), [#allocation3], %s1326_s5 }
  0x13   : > { %s178_s7 = sadd.s32 (%p44_p3), %s1328_s6, %s1327_s30 }
  0x14   : > { %s1329_s8 = sshll.u32 (%p44_p3), %s178_s7, 2 }
  0x15   : > { %s180_s11 = scalar_lea.vmem %s2041_s0, %s1329_s8 }
  0x16   : > { %v193_v0 = vld [vmem:[%s180_s11] sm:$0xff]  ;;  %v195_v1 = vld [vmem:[%s180_s11 + $0x8] sm:$0xff] }
  0x17   : > { %v197_v2 = vld [vmem:[%s180_s11 + $0x80] sm:$0xff]  ;;  %194 = vst [vmem:[%s175_s12] sm:$0xff] %v193_v0  ;;  %196 = vst [vmem:[%s175_s12 + $0x8] sm:$0xff] %v195_v1  ;;  %v199_v3 = vld [vmem:[%s180_s11 + $0x88] sm:$0xff] }
  0x18   : > { %198 = vst [vmem:[%s175_s12 + $0x10] sm:$0xff] %v197_v2  ;;  %v201_v4 = vld [vmem:[%s180_s11 + $0x100] sm:$0xff]  ;;  %v203_v5 = vld [vmem:[%s180_s11 + $0x108] sm:$0xff]  ;;  %200 = vst [vmem:[%s175_s12 + $0x18] sm:$0xff] %v199_v3 }
  0x19   : > { %202 = vst [vmem:[%s175_s12 + $0x20] sm:$0xff] %v201_v4  ;;  %204 = vst [vmem:[%s175_s12 + $0x28] sm:$0xff] %v203_v5  ;;  %v205_v6 = vld [vmem:[%s180_s11 + $0x180] sm:$0xff]  ;;  %v207_v7 = vld [vmem:[%s180_s11 + $0x188] sm:$0xff] }
  0x1a   : > { %206 = vst [vmem:[%s175_s12 + $0x30] sm:$0xff] %v205_v6  ;;  %208 = vst [vmem:[%s175_s12 + $0x38] sm:$0xff] %v207_v7 }
  0x1b PF: > { %p1330_p7 = scmp.ge.s32.totalorder %s1695_s21, 1  ;;  %p223_p8 = scmp.lt.s32.totalorder %s1695_s21, 17 }
  0x1d   : > { %p224_p9 = pnand %p1330_p7, %p223_p8 }
  0x1e   : > { %s230_s13 = sand.u32 (!%p224_p9), 1, %s1671_s15   ;;  %s1332_s14 = sshll.u32 (!%p224_p9), %s1679_s17, 6 }
  0x1f   : > { %227 = sbr.rel (%p224_p9) target bundleno = 574 (0x23e), region = 55  ;;  %s1331_s24 = sshll.u32 (!%p224_p9), %s230_s13, 6 }
  0x20   : > { %p263_p10 = scmp.lt.s32.totalorder (!%p224_p9), %s1332_s14, 511  ;;  %p269_p11 = scmp.lt.s32.totalorder (!%p224_p9), %s1683_s18, 1 }
  0x21   : > { %s1800_s8 = scalar_lea.vmem (!%p224_p9), [#allocation3], %s1331_s24  ;;  %p1337_p12 = scmp.ne.s32.totalorder (!%p224_p9), %s1679_s17, 0 }
  0x24   : > { %s2059_s14 = smov (!%p263_p10, %s1332_s14), 511  ;;  %s2061_s18 = smov (!%p269_p11, %s1683_s18), 1 }
  0x25   : > { %s1445_s25 = sshll.u32 %s2059_s14, 3  ;;  %s1446_s30 = sshll.u32 %s2061_s18, 7 }
  0x26   : > { %s1793_s29 = scalar_lea.vmem %s2042_s1, %s1445_s25  ;;  %s1798_s7 = scalar_lea.vmem %s2045_s4, %s1446_s30 }
  0x27   : > { %278 = sbr.rel (%p1337_p12) target bundleno = 49 (0x31), region = 63 }
  0x2c   : > { %v1697_v8 = vmov 0.0  }
  0x2d   : > { %279 = vst [vmem:[#allocation2 + $0x30] sm:$0xff] %v1697_v8  ;;  %280 = vst [vmem:[#allocation2] sm:$0xff] %v1697_v8 }
  0x2e   : > { %281 = vst [vmem:[#allocation2 + $0x18] sm:$0xff] %v1697_v8  ;;  %282 = vst [vmem:[#allocation2 + $0x10] sm:$0xff] %v1697_v8 }
  0x2f   : > { %283 = vst [vmem:[#allocation2 + $0x8] sm:$0xff] %v1697_v8  ;;  %284 = vst [vmem:[#allocation2 + $0x20] sm:$0xff] %v1697_v8 }
  0x30   : > { %285 = vst [vmem:[#allocation2 + $0x28] sm:$0xff] %v1697_v8  ;;  %286 = vst [vmem:[#allocation2 + $0x38] sm:$0xff] %v1697_v8 }
  0x31 PF: > { %v1525_v9 = vld [vmem:[%s1793_s29 + $0x74] ss:$8 sps:$4 sm:$0xff]   ;;  %v1529_v11 = vld [vmem:[%s1793_s29 + $0x70] ss:$8 sps:$4 sm:$0xff]   ;;  %v1531_v13 = vld [vmem:[%s1793_s29 + $0x64] ss:$8 sps:$4 sm:$0xff]  }
  0x32   : > { %v1527_v10 = vld [vmem:[%s1793_s29 + $0x174] ss:$8 sps:$4 sm:$0xff]   ;;  %727 = vmatprep.subr.bf16.mxu0 %v1525_v9  ;;  %v1530_v12 = vld [vmem:[%s1793_s29 + $0x170] ss:$8 sps:$4 sm:$0xff]   ;;  %v1533_v14 = vld [vmem:[%s1793_s29 + $0x164] ss:$8 sps:$4 sm:$0xff]  }
  0x33   : > { %780 = vmatprep.subr.bf16.mxu1 %v1527_v10  ;;  %728 = vmatpush1.bf16.msra.mxu0 %v1529_v11  ;;  %v1535_v15 = vld [vmem:[%s1793_s29 + $0x60] ss:$8 sps:$4 sm:$0xff]   ;;  %v1537_v17 = vld [vmem:[%s1793_s29 + $0x54] ss:$8 sps:$4 sm:$0xff]   ;;  %v1541_v19 = vld [vmem:[%s1793_s29 + $0x50] ss:$8 sps:$4 sm:$0xff]  }
  0x34   : > { %781 = vmatpush1.bf16.msra.mxu1 %v1530_v12  ;;  %729 = vmatprep.subr.bf16.mxu0 %v1531_v13  ;;  %v1536_v16 = vld [vmem:[%s1793_s29 + $0x160] ss:$8 sps:$4 sm:$0xff]   ;;  %v1539_v18 = vld [vmem:[%s1793_s29 + $0x154] ss:$8 sps:$4 sm:$0xff]   ;;  %v1542_v20 = vld [vmem:[%s1793_s29 + $0x150] ss:$8 sps:$4 sm:$0xff]  }
  0x35   : > { %782 = vmatprep.subr.bf16.mxu1 %v1533_v14  ;;  %v1543_v21 = vld [vmem:[%s1793_s29 + $0x44] ss:$8 sps:$4 sm:$0xff]   ;;  %v1547_v23 = vld [vmem:[%s1793_s29 + $0x40] ss:$8 sps:$4 sm:$0xff]   ;;  %v1549_v25 = vld [vmem:[%s1793_s29 + $0x34] ss:$8 sps:$4 sm:$0xff]  }
  0x36   : > { %v1545_v22 = vld [vmem:[%s1793_s29 + $0x144] ss:$8 sps:$4 sm:$0xff]   ;;  %v1548_v24 = vld [vmem:[%s1793_s29 + $0x140] ss:$8 sps:$4 sm:$0xff]   ;;  %v1551_v26 = vld [vmem:[%s1793_s29 + $0x134] ss:$8 sps:$4 sm:$0xff]  }
  0x37   : > { %730 = vmatpush1.bf16.msra.mxu0 %v1535_v15  ;;  %v1553_v27 = vld [vmem:[%s1793_s29 + $0x30] ss:$8 sps:$4 sm:$0xff]   ;;  %v1555_v29 = vld [vmem:[%s1793_s29 + $0x24] ss:$8 sps:$4 sm:$0xff]   ;;  %v1559_v31 = vld [vmem:[%s1793_s29 + $0x20] ss:$8 sps:$4 sm:$0xff]  }
  0x38   : > { %783 = vmatpush1.bf16.msra.mxu1 %v1536_v16  ;;  %731 = vmatprep.subr.bf16.mxu0 %v1537_v17  ;;  %v1554_v28 = vld [vmem:[%s1793_s29 + $0x130] ss:$8 sps:$4 sm:$0xff]   ;;  %v1557_v30 = vld [vmem:[%s1793_s29 + $0x124] ss:$8 sps:$4 sm:$0xff]   ;;  %v1560_v32 = vld [vmem:[%s1793_s29 + $0x120] ss:$8 sps:$4 sm:$0xff]  }
  0x39   : > { %784 = vmatprep.subr.bf16.mxu1 %v1539_v18  ;;  %v1561_v33 = vld [vmem:[%s1793_s29 + $0x14] ss:$8 sps:$4 sm:$0xff]   ;;  %v1565_v35 = vld [vmem:[%s1793_s29 + $0x10] ss:$8 sps:$4 sm:$0xff]   ;;  %v1567_v37 = vld [vmem:[%s1793_s29 + $0x4] ss:$8 sps:$4 sm:$0xff]  }
  0x3a   : > { %v1563_v34 = vld [vmem:[%s1793_s29 + $0x114] ss:$8 sps:$4 sm:$0xff]   ;;  %v1566_v36 = vld [vmem:[%s1793_s29 + $0x110] ss:$8 sps:$4 sm:$0xff]   ;;  %v1569_v38 = vld [vmem:[%s1793_s29 + $0x104] ss:$8 sps:$4 sm:$0xff]  }
  0x3b   : > { %732 = vmatpush1.bf16.msra.mxu0 %v1541_v19  ;;  %v1571_v39 = vld [vmem:[%s1793_s29] ss:$8 sps:$4 sm:$0xff]   ;;  %v1573_v41 = vld [vmem:[%s1793_s29 + $0xf4] ss:$8 sps:$4 sm:$0xff]   ;;  %v1577_v43 = vld [vmem:[%s1793_s29 + $0xf0] ss:$8 sps:$4 sm:$0xff]  }
  0x3c   : > { %785 = vmatpush1.bf16.msra.mxu1 %v1542_v20  ;;  %733 = vmatprep.subr.bf16.mxu0 %v1543_v21  ;;  %v1572_v40 = vld [vmem:[%s1793_s29 + $0x100] ss:$8 sps:$4 sm:$0xff]   ;;  %v1575_v42 = vld [vmem:[%s1793_s29 + $0x1f4] ss:$8 sps:$4 sm:$0xff]   ;;  %v1578_v44 = vld [vmem:[%s1793_s29 + $0x1f0] ss:$8 sps:$4 sm:$0xff]  }
  0x3d   : > { %786 = vmatprep.subr.bf16.mxu1 %v1545_v22  ;;  %v1579_v45 = vld [vmem:[%s1793_s29 + $0xe4] ss:$8 sps:$4 sm:$0xff]   ;;  %v1583_v47 = vld [vmem:[%s1793_s29 + $0xe0] ss:$8 sps:$4 sm:$0xff]   ;;  %v1585_v49 = vld [vmem:[%s1793_s29 + $0xd4] ss:$8 sps:$4 sm:$0xff]  }
  0x3e   : > { %v1581_v46 = vld [vmem:[%s1793_s29 + $0x1e4] ss:$8 sps:$4 sm:$0xff]   ;;  %v1584_v48 = vld [vmem:[%s1793_s29 + $0x1e0] ss:$8 sps:$4 sm:$0xff]   ;;  %v1587_v50 = vld [vmem:[%s1793_s29 + $0x1d4] ss:$8 sps:$4 sm:$0xff]  }
  0x3f   : > { %734 = vmatpush1.bf16.msra.mxu0 %v1547_v23  ;;  %v1589_v51 = vld [vmem:[%s1793_s29 + $0xd0] ss:$8 sps:$4 sm:$0xff]   ;;  %v1591_v53 = vld [vmem:[%s1793_s29 + $0xc4] ss:$8 sps:$4 sm:$0xff]   ;;  %v1595_v55 = vld [vmem:[%s1793_s29 + $0xc0] ss:$8 sps:$4 sm:$0xff]  }
  0x40   : > { %787 = vmatpush1.bf16.msra.mxu1 %v1548_v24  ;;  %735 = vmatprep.subr.bf16.mxu0 %v1549_v25  ;;  %v1590_v52 = vld [vmem:[%s1793_s29 + $0x1d0] ss:$8 sps:$4 sm:$0xff]   ;;  %v1593_v54 = vld [vmem:[%s1793_s29 + $0x1c4] ss:$8 sps:$4 sm:$0xff]   ;;  %v1596_v56 = vld [vmem:[%s1793_s29 + $0x1c0] ss:$8 sps:$4 sm:$0xff]  }
  0x41   : > { %788 = vmatprep.subr.bf16.mxu1 %v1551_v26  ;;  %v1597_v57 = vld [vmem:[%s1793_s29 + $0xb4] ss:$8 sps:$4 sm:$0xff]   ;;  %v1601_v61 = vld [vmem:[%s1793_s29 + $0xb0] ss:$8 sps:$4 sm:$0xff]   ;;  %v1603_v63 = vld [vmem:[%s1793_s29 + $0xa4] ss:$8 sps:$4 sm:$0xff]  }
  0x42   : > { %v1623_v58 = vld [vmem:[%s1800_s8 + $0x4] ss:$16 sps:$4 sm:$0xff]   ;;  %v1626_v60 = vld [vmem:[%s1800_s8 + $0xc] ss:$16 sps:$4 sm:$0xff]   ;;  %v1602_v62 = vld [vmem:[%s1793_s29 + $0x1b0] ss:$8 sps:$4 sm:$0xff]  }
  0x43   : > { %736 = vmatpush1.bf16.msra.mxu0 %v1553_v27  ;;  %v1599_v59 = vld [vmem:[%s1793_s29 + $0x1b4] ss:$8 sps:$4 sm:$0xff]   ;;  %759 = vmatprep.mubr.bf16.mxu0 %v1623_v58  ;;  %v1605_v0 = vld [vmem:[%s1793_s29 + $0x1a4] ss:$8 sps:$4 sm:$0xff]   ;;  %v1607_v1 = vld [vmem:[%s1793_s29 + $0xa0] ss:$8 sps:$4 sm:$0xff]  }
  0x44   : > { %789 = vmatpush1.bf16.msra.mxu1 %v1554_v28  ;;  %737 = vmatprep.subr.bf16.mxu0 %v1555_v29  ;;  %v1608_v2 = vld [vmem:[%s1793_s29 + $0x1a0] ss:$8 sps:$4 sm:$0xff]   ;;  %v1609_v3 = vld [vmem:[%s1793_s29 + $0x94] ss:$8 sps:$4 sm:$0xff]   ;;  %v1613_v5 = vld [vmem:[%s1793_s29 + $0x90] ss:$8 sps:$4 sm:$0xff]  }
  0x45   : > { %790 = vmatprep.subr.bf16.mxu1 %v1557_v30  ;;  %812 = vmatprep.mubr.bf16.mxu1 %v1626_v60  ;;  %v1611_v4 = vld [vmem:[%s1793_s29 + $0x194] ss:$8 sps:$4 sm:$0xff]   ;;  %v1614_v6 = vld [vmem:[%s1793_s29 + $0x190] ss:$8 sps:$4 sm:$0xff]   ;;  %v1615_v7 = vld [vmem:[%s1793_s29 + $0x84] ss:$8 sps:$4 sm:$0xff]  }
  0x46   : > { %v1617_v8 = vld [vmem:[%s1793_s29 + $0x184] ss:$8 sps:$4 sm:$0xff]   ;;  %v1619_v9 = vld [vmem:[%s1793_s29 + $0x80] ss:$8 sps:$4 sm:$0xff]   ;;  %v287_v18 = vld [vmem:[#allocation2 + $0x30] sm:$0xff]  ;;  %p1410_p13 = scmp.ne.s32.totalorder %s1679_s17, 7 }
  0x47   : > { %738 = vmatpush1.bf16.msra.mxu0 %v1559_v31  ;;  %v1620_v10 = vld [vmem:[%s1793_s29 + $0x180] ss:$8 sps:$4 sm:$0xff]   ;;  %v1627_v13 = vld [vmem:[%s1800_s8 + $0x24] ss:$16 sps:$4 sm:$0xff]   ;;  %v1629_v14 = vld [vmem:[%s1800_s8 + $0x2c] ss:$16 sps:$4 sm:$0xff]  }
  0x48   : > { %791 = vmatpush1.bf16.msra.mxu1 %v1560_v32  ;;  %739 = vmatprep.subr.bf16.mxu0 %v1561_v33  ;;  %v1621_v11 = vld [vmem:[%s1800_s8] ss:$16 sps:$4 sm:$0xff]   ;;  %v1624_v12 = vld [vmem:[%s1800_s8 + $0x8] ss:$16 sps:$4 sm:$0xff]  }
  0x49   : > { %792 = vmatprep.subr.bf16.mxu1 %v1563_v34  ;;  %v1631_v15 = vld [vmem:[%s1800_s8 + $0x20] ss:$16 sps:$4 sm:$0xff]   ;;  %v1632_v16 = vld [vmem:[%s1800_s8 + $0x28] ss:$16 sps:$4 sm:$0xff]  }
  0x4a   : > { %v288_v22 = vld [vmem:[#allocation2] sm:$0xff]  ;;  %v289_v27 = vld [vmem:[#allocation2 + $0x18] sm:$0xff]  ;;  %v290_v32 = vld [vmem:[#allocation2 + $0x10] sm:$0xff] }
  0x4b   : > { %740 = vmatpush1.bf16.msra.mxu0 %v1565_v35 }
  0x4c   : > { %793 = vmatpush1.bf16.msra.mxu1 %v1566_v36  ;;  %741 = vmatprep.subr.bf16.mxu0 %v1567_v37  ;;  %v291_v37 = vld [vmem:[#allocation2 + $0x8] sm:$0xff] }
  0x4d   : > { %794 = vmatprep.subr.bf16.mxu1 %v1569_v38 }
  0x4f   : > { %742 = vmatpush1.bf16.msra.mxu0 %v1571_v39 }
  0x50   : > { %795 = vmatpush1.bf16.msra.mxu1 %v1572_v40  ;;  %743 = vmatprep.subr.bf16.mxu0 %v1573_v41 }
  0x51   : > { %796 = vmatprep.subr.bf16.mxu1 %v1575_v42  ;;  %v292_v42 = vld [vmem:[#allocation2 + $0x20] sm:$0xff] }
  0x53   : > { %744 = vmatpush2.bf16.msra.mxu0 %v1577_v43 }
  0x54   : > { %797 = vmatpush2.bf16.msra.mxu1 %v1578_v44  ;;  %745 = vmatprep.subr.bf16.mxu0 %v1579_v45 }
  0x55   : > { %798 = vmatprep.subr.bf16.mxu1 %v1581_v46 }
  0x57   : > { %746 = vmatpush2.bf16.msra.mxu0 %v1583_v47  ;;  %v293_v47 = vld [vmem:[#allocation2 + $0x28] sm:$0xff] }
  0x58   : > { %799 = vmatpush2.bf16.msra.mxu1 %v1584_v48  ;;  %747 = vmatprep.subr.bf16.mxu0 %v1585_v49 }
  0x59   : > { %800 = vmatprep.subr.bf16.mxu1 %v1587_v50 }
  0x5b   : > { %748 = vmatpush2.bf16.msra.mxu0 %v1589_v51 }
  0x5c   : > { %801 = vmatpush2.bf16.msra.mxu1 %v1590_v52  ;;  %749 = vmatprep.subr.bf16.mxu0 %v1591_v53  ;;  %v294_v52 = vld [vmem:[#allocation2 + $0x38] sm:$0xff] }
  0x5d   : > { %802 = vmatprep.subr.bf16.mxu1 %v1593_v54 }
  0x5f   : > { %750 = vmatpush2.bf16.msra.mxu0 %v1595_v55 }
  0x60   : > { %803 = vmatpush2.bf16.msra.mxu1 %v1596_v56  ;;  %751 = vmatprep.subr.bf16.mxu0 %v1597_v57 }
  0x61   : > { %804 = vmatprep.subr.bf16.mxu1 %v1599_v59 }
  0x63   : > { %752 = vmatpush2.bf16.msra.mxu0 %v1601_v61 }
  0x64   : > { %805 = vmatpush2.bf16.msra.mxu1 %v1602_v62  ;;  %753 = vmatprep.subr.bf16.mxu0 %v1603_v63 }
  0x65   : > { %806 = vmatprep.subr.bf16.mxu1 %v1605_v0 }
  0x67   : > { %754 = vmatpush2.bf16.msra.mxu0 %v1607_v1 }
  0x68   : > { %807 = vmatpush2.bf16.msra.mxu1 %v1608_v2  ;;  %755 = vmatprep.subr.bf16.mxu0 %v1609_v3 }
  0x69   : > { %808 = vmatprep.subr.bf16.mxu1 %v1611_v4 }
  0x6b   : > { %756 = vmatpush2.bf16.msra.mxu0 %v1613_v5 }
  0x6c   : > { %809 = vmatpush2.bf16.msra.mxu1 %v1614_v6  ;;  %757 = vmatprep.subr.bf16.mxu0 %v1615_v7 }
  0x6d   : > { %810 = vmatprep.subr.bf16.mxu1 %v1617_v8 }
  0x6f   : > { %758 = vmatpush2.bf16.msra.mxu0 %v1619_v9 }
  0x70   : > { %811 = vmatpush2.bf16.msra.mxu1 %v1620_v10 }
  0x72   : > { %760 = vmatmul.mubr.bf16.vlgmr.msra.gmra.mxu0 %v1621_v11 }
  0x73   : > { %813 = vmatmul.mubr.bf16.vlgmr.msra.gmra.mxu1 %v1624_v12  ;;  %769 = vmatprep.mubr.bf16.mxu0 %v1627_v13 }
  0x74   : > { %822 = vmatprep.mubr.bf16.mxu1 %v1629_v14 }
  0x7a   : > { %770 = vmatmul.mubr.bf16.gmra.mxu0 %v1631_v15 }
  0x7b   : > { %823 = vmatmul.mubr.bf16.gmra.mxu1 %v1632_v16 }
 0x132   : > { %v761_v17 = vpop.f32.mrf.mxu0 }
 0x133   : > { %v814_v19 = vpop.f32.mrf.mxu1 }
 0x134   : > { %v815_v20 = vadd.f32 %v814_v19, %v761_v17  ;;  %v763_v21 = vpop.f32.mrf.mxu0 }
 0x135   : > { %v816_v23 = vpop.f32.mrf.mxu1 }
 0x136   : > { %v833_v24 = vadd.f32 %v815_v20, %v287_v18  ;;  %v817_v25 = vadd.f32 %v816_v23, %v763_v21  ;;  %v765_v26 = vpop.f32.mrf.mxu0 }
 0x137   : > { %v818_v28 = vpop.f32.mrf.mxu1 }
 0x138   : > { %841 = vst [vmem:[#allocation2 + $0x30] sm:$0xff] %v833_v24  ;;  %v834_v29 = vadd.f32 %v817_v25, %v288_v22  ;;  %v819_v30 = vadd.f32 %v818_v28, %v765_v26  ;;  %v767_v31 = vpop.f32.mrf.mxu0 }
 0x139   : > { %v820_v33 = vpop.f32.mrf.mxu1 }
 0x13a   : > { %842 = vst [vmem:[#allocation2] sm:$0xff] %v834_v29  ;;  %v835_v34 = vadd.f32 %v819_v30, %v289_v27  ;;  %v821_v35 = vadd.f32 %v820_v33, %v767_v31  ;;  %v771_v36 = vpop.f32.mrf.mxu0 }
 0x13b   : > { %v824_v38 = vpop.f32.mrf.mxu1 }
 0x13c   : > { %843 = vst [vmem:[#allocation2 + $0x18] sm:$0xff] %v835_v34  ;;  %v836_v39 = vadd.f32 %v821_v35, %v290_v32  ;;  %v825_v40 = vadd.f32 %v824_v38, %v771_v36  ;;  %v773_v41 = vpop.f32.mrf.mxu0 }
 0x13d   : > { %v826_v43 = vpop.f32.mrf.mxu1 }
 0x13e   : > { %844 = vst [vmem:[#allocation2 + $0x10] sm:$0xff] %v836_v39  ;;  %v837_v44 = vadd.f32 %v825_v40, %v291_v37  ;;  %v827_v45 = vadd.f32 %v826_v43, %v773_v41  ;;  %v775_v46 = vpop.f32.mrf.mxu0 }
 0x13f   : > { %v828_v48 = vpop.f32.mrf.mxu1 }
 0x140   : > { %845 = vst [vmem:[#allocation2 + $0x8] sm:$0xff] %v837_v44  ;;  %v838_v49 = vadd.f32 %v827_v45, %v292_v42  ;;  %v829_v50 = vadd.f32 %v828_v48, %v775_v46  ;;  %v777_v51 = vpop.f32.mrf.mxu0 }
 0x141   : > { %v830_v53 = vpop.f32.mrf.mxu1 }
 0x142   : > { %846 = vst [vmem:[#allocation2 + $0x20] sm:$0xff] %v838_v49  ;;  %v839_v54 = vadd.f32 %v829_v50, %v293_v47  ;;  %v831_v55 = vadd.f32 %v830_v53, %v777_v51  ;;  %852 = sbr.rel (%p1410_p13) target bundleno = 574 (0x23e), region = 67 }
 0x144   : > { %847 = vst [vmem:[#allocation2 + $0x28] sm:$0xff] %v839_v54  ;;  %v840_v56 = vadd.f32 %v831_v55, %v294_v52 }
 0x146   : > { %848 = vst [vmem:[#allocation2 + $0x38] sm:$0xff] %v840_v56 }
 0x147   : > { %v873_v59 = vld [vmem:[#allocation2 + $0x8] sm:$0xff]  ;;  %v870_v62 = vld [vmem:[#allocation2] sm:$0xff]  ;;  %v872_v63 = vld [vmem:[#allocation2 + $0x10] sm:$0xff]  ;;  %v1698_v0 = vmov 0   ;;  %vm953_vm0 = vcmask 261120  }
 0x148   : > { %1010 = vmatprep.mubr.bf16.mxu0 %v1698_v0  ;;  %1050 = vmatprep.mubr.bf16.mxu1 %v1698_v0  ;;  %v878_v2 = vpack.c.bf16 %v872_v63, %v870_v62  ;;  %v869_v3 = vld [vmem:[#allocation2 + $0x30] sm:$0xff]  ;;  %v871_v4 = vld [vmem:[#allocation2 + $0x18] sm:$0xff]  ;;  %v1633_v6 = vld [vmem:[%s2043_s2] sm:$0xff]  }
 0x149   : > { %v874_v57 = vld [vmem:[#allocation2 + $0x20] sm:$0xff]  ;;  %v877_v5 = vpack.c.bf16 %v871_v4, %v869_v3  ;;  %v1635_v8 = vld [vmem:[%s2043_s2 + $0x8] sm:$0xff]   ;;  %v1637_v10 = vld [vmem:[%s2043_s2 + $0x10] sm:$0xff]  }
 0x14a   : > { %v1634_v7 = vld [vmem:[%s2043_s2 + $0x20] sm:$0xff]   ;;  %v1636_v9 = vld [vmem:[%s2043_s2 + $0x28] sm:$0xff]   ;;  %v1638_v11 = vld [vmem:[%s2043_s2 + $0x30] sm:$0xff]  }
 0x14b   : > { %v875_v61 = vld [vmem:[#allocation2 + $0x28] sm:$0xff]  ;;  %v1639_v12 = vld [vmem:[%s2043_s2 + $0x18] sm:$0xff]   ;;  %v881_v14 = vld [vmem:[%s2044_s3] sm:$0xff] }
 0x14c   : > { %v879_v1 = vpack.c.bf16 %v875_v61, %v873_v59  ;;  %v1640_v13 = vld [vmem:[%s2043_s2 + $0x38] sm:$0xff]   ;;  %v897_v15 = vld [vmem:[%s2044_s3 + $0x80] sm:$0xff]  ;;  %v882_v18 = vld [vmem:[%s2044_s3 + $0x8] sm:$0xff] }
 0x14d   : > { %v876_v58 = vld [vmem:[#allocation2 + $0x38] sm:$0xff]  ;;  %v898_v19 = vld [vmem:[%s2044_s3 + $0x88] sm:$0xff]  ;;  %v883_v26 = vld [vmem:[%s2044_s3 + $0x10] sm:$0xff] }
 0x14e   : > { %v880_v60 = vpack.c.bf16 %v876_v58, %v874_v57  ;;  %v899_v27 = vld [vmem:[%s2044_s3 + $0x90] sm:$0xff]  ;;  %v884_v34 = vld [vmem:[%s2044_s3 + $0x18] sm:$0xff]  ;;  %v885_v40 = vld [vmem:[%s2044_s3 + $0x20] sm:$0xff] }
 0x14f   : > { %v900_v35 = vld [vmem:[%s2044_s3 + $0x98] sm:$0xff]  ;;  %v901_v41 = vld [vmem:[%s2044_s3 + $0xa0] sm:$0xff]  ;;  %v886_v48 = vld [vmem:[%s2044_s3 + $0x28] sm:$0xff] }
 0x150   : > { %990 = vmatprep.subr.bf16.mxu0 %v880_v60  ;;  %1463 = vmatprep.subr.bf16.mxu1 %v880_v60  ;;  %v902_v49 = vld [vmem:[%s2044_s3 + $0xa8] sm:$0xff]  ;;  %v887_v60 = vld [vmem:[%s2044_s3 + $0x30] sm:$0xff] }
 0x151   : > { %991 = vmatpush1.bf16.msra.mxu0 %v879_v1  ;;  %1465 = vmatpush1.bf16.msra.mxu1 %v879_v1  ;;  %v903_v61 = vld [vmem:[%s2044_s3 + $0xb0] sm:$0xff] }
 0x152   : > { %992 = vmatprep.subr.bf16.mxu0 %v878_v2  ;;  %1464 = vmatprep.subr.bf16.mxu1 %v878_v2 }
 0x155   : > { %993 = vmatpush1.bf16.msra.mxu0 %v877_v5  ;;  %1466 = vmatpush1.bf16.msra.mxu1 %v877_v5 }
 0x158   : > { %1419 = vmatmul.mubr.msk.bf16.vlgmr.msra.gmra.mxu0 %vm953_vm0, %v1633_v6  ;;  %1423 = vmatmul.mubr.msk.bf16.vlgmr.msra.gmra.mxu1 %vm953_vm0, %v1634_v7  ;;  %v888_v6 = vld [vmem:[%s2044_s3 + $0x38] sm:$0xff] }
 0x159   : > { %1020 = vmatprep.mubr.bf16.mxu0 %v1698_v0  ;;  %1060 = vmatprep.mubr.bf16.mxu1 %v1698_v0  ;;  %v904_v7 = vld [vmem:[%s2044_s3 + $0xb8] sm:$0xff] }
 0x160   : > { %1420 = vmatmul.mubr.msk.bf16.gmra.mxu0 %vm953_vm0, %v1635_v8  ;;  %1424 = vmatmul.mubr.msk.bf16.gmra.mxu1 %vm953_vm0, %v1636_v9 }
 0x161   : > { %1030 = vmatprep.mubr.bf16.mxu0 %v1698_v0  ;;  %1070 = vmatprep.mubr.bf16.mxu1 %v1698_v0 }
 0x168   : > { %1421 = vmatmul.mubr.msk.bf16.gmra.mxu0 %vm953_vm0, %v1637_v10  ;;  %1425 = vmatmul.mubr.msk.bf16.gmra.mxu1 %vm953_vm0, %v1638_v11 }
 0x169   : > { %1040 = vmatprep.mubr.bf16.mxu0 %v1698_v0  ;;  %1080 = vmatprep.mubr.bf16.mxu1 %v1698_v0 }
 0x170   : > { %1422 = vmatmul.mubr.msk.bf16.gmra.mxu0 %vm953_vm0, %v1639_v12  ;;  %1426 = vmatmul.mubr.msk.bf16.gmra.mxu1 %vm953_vm0, %v1640_v13  ;;  %v889_v12 = vld [vmem:[%s2044_s3 + $0x40] sm:$0xff] }
 0x171   : > { %v905_v13 = vld [vmem:[%s2044_s3 + $0xc0] sm:$0xff] }
 0x218   : > { %v1012_v16 = vpop.f32.mrf.mxu0  ;;  %v1052_v17 = vpop.f32.mrf.mxu1 }
 0x219   : > { %v1013_v20 = vadd.f32 %v1012_v16, %v881_v14  ;;  %v1053_v21 = vadd.f32 %v1052_v17, %v897_v15 }
 0x21a   : > { %v1014_v22 = vpop.f32.mrf.mxu0  ;;  %v1054_v23 = vpop.f32.mrf.mxu1 }
 0x21b   : > { %v1015_v24 = vadd.f32 %v1014_v22, %v882_v18  ;;  %v1055_v25 = vadd.f32 %v1054_v23, %v898_v19  ;;  %v1091_v30 = vmax.f32 %v1013_v20, 0.0  ;;  %v1107_v31 = vmax.f32 %v1053_v21, 0.0  ;;  %v890_v20 = vld [vmem:[%s2044_s3 + $0x48] sm:$0xff] }
 0x21c   : > { %v1016_v28 = vpop.f32.mrf.mxu0  ;;  %v1056_v29 = vpop.f32.mrf.mxu1  ;;  %v906_v21 = vld [vmem:[%s2044_s3 + $0xc8] sm:$0xff] }
 0x21d   : > { %v1092_v32 = vmax.f32 %v1015_v24, 0.0  ;;  %v1108_v33 = vmax.f32 %v1055_v25, 0.0  ;;  %v1017_v36 = vadd.f32 %v1016_v28, %v883_v26  ;;  %v1057_v37 = vadd.f32 %v1056_v29, %v899_v27 }
 0x21e   : > { %v1018_v38 = vpop.f32.mrf.mxu0  ;;  %v1058_v39 = vpop.f32.mrf.mxu1 }
 0x21f   : > { %v1447_v42 = vpack.c.bf16 %v1092_v32, %v1091_v30  ;;  %v1455_v43 = vpack.c.bf16 %v1108_v33, %v1107_v31  ;;  %v1019_v44 = vadd.f32 %v1018_v38, %v884_v34  ;;  %v1059_v45 = vadd.f32 %v1058_v39, %v900_v35  ;;  %v891_v32 = vld [vmem:[%s2044_s3 + $0x50] sm:$0xff] }
 0x220   : > { %v1022_v46 = vpop.f32.mrf.mxu0  ;;  %v1062_v47 = vpop.f32.mrf.mxu1  ;;  %v1093_v52 = vmax.f32 %v1017_v36, 0.0  ;;  %v1109_v53 = vmax.f32 %v1057_v37, 0.0  ;;  %v907_v33 = vld [vmem:[%s2044_s3 + $0xd0] sm:$0xff] }
 0x221   : > { %1219 = vst [vmem:[%s1798_s7] sm:$0xff] %v1447_v42  ;;  %1227 = vst [vmem:[%s1798_s7 + $0x40] sm:$0xff] %v1455_v43  ;;  %v1023_v50 = vadd.f32 %v1022_v46, %v885_v40  ;;  %v1063_v51 = vadd.f32 %v1062_v47, %v901_v41  ;;  %v1094_v54 = vmax.f32 %v1019_v44, 0.0  ;;  %v1110_v55 = vmax.f32 %v1059_v45, 0.0  ;;  %v892_v42 = vld [vmem:[%s2044_s3 + $0x58] sm:$0xff] }
 0x222   : > { %v1024_v56 = vpop.f32.mrf.mxu0  ;;  %v1064_v57 = vpop.f32.mrf.mxu1  ;;  %v908_v43 = vld [vmem:[%s2044_s3 + $0xd8] sm:$0xff] }
 0x223   : > { %v1025_v58 = vadd.f32 %v1024_v56, %v886_v48  ;;  %v1065_v59 = vadd.f32 %v1064_v57, %v902_v49  ;;  %v1448_v62 = vpack.c.bf16 %v1094_v54, %v1093_v52  ;;  %v1456_v63 = vpack.c.bf16 %v1110_v55, %v1109_v53  ;;  %v893_v48 = vld [vmem:[%s2044_s3 + $0x60] sm:$0xff]  ;;  %v894_v56 = vld [vmem:[%s2044_s3 + $0x68] sm:$0xff] }
 0x224   : > { %v1026_v0 = vpop.f32.mrf.mxu0  ;;  %v1066_v1 = vpop.f32.mrf.mxu1  ;;  %v1095_v2 = vmax.f32 %v1023_v50, 0.0  ;;  %v1111_v3 = vmax.f32 %v1063_v51, 0.0  ;;  %v909_v49 = vld [vmem:[%s2044_s3 + $0xe0] sm:$0xff]  ;;  %v910_v57 = vld [vmem:[%s2044_s3 + $0xe8] sm:$0xff] }
 0x225   : > { %v1096_v4 = vmax.f32 %v1025_v58, 0.0  ;;  %v1112_v5 = vmax.f32 %v1065_v59, 0.0  ;;  %1220 = vst [vmem:[%s1798_s7 + $0x8] sm:$0xff] %v1448_v62  ;;  %1228 = vst [vmem:[%s1798_s7 + $0x48] sm:$0xff] %v1456_v63  ;;  %v1027_v8 = vadd.f32 %v1026_v0, %v887_v60  ;;  %v1067_v9 = vadd.f32 %v1066_v1, %v903_v61 }
 0x226   : > { %v1028_v10 = vpop.f32.mrf.mxu0  ;;  %v1068_v11 = vpop.f32.mrf.mxu1 }
 0x227   : > { %v1449_v14 = vpack.c.bf16 %v1096_v4, %v1095_v2  ;;  %v1457_v15 = vpack.c.bf16 %v1112_v5, %v1111_v3  ;;  %v1029_v16 = vadd.f32 %v1028_v10, %v888_v6  ;;  %v1069_v17 = vadd.f32 %v1068_v11, %v904_v7  ;;  %v895_v4 = vld [vmem:[%s2044_s3 + $0x70] sm:$0xff] }
 0x228   : > { %v1032_v18 = vpop.f32.mrf.mxu0  ;;  %v1072_v19 = vpop.f32.mrf.mxu1  ;;  %v1097_v24 = vmax.f32 %v1027_v8, 0.0  ;;  %v1113_v25 = vmax.f32 %v1067_v9, 0.0  ;;  %v911_v5 = vld [vmem:[%s2044_s3 + $0xf0] sm:$0xff] }
 0x229   : > { %1221 = vst [vmem:[%s1798_s7 + $0x10] sm:$0xff] %v1449_v14  ;;  %1229 = vst [vmem:[%s1798_s7 + $0x50] sm:$0xff] %v1457_v15  ;;  %v1033_v22 = vadd.f32 %v1032_v18, %v889_v12  ;;  %v1073_v23 = vadd.f32 %v1072_v19, %v905_v13  ;;  %v1098_v26 = vmax.f32 %v1029_v16, 0.0  ;;  %v1114_v27 = vmax.f32 %v1069_v17, 0.0  ;;  %v896_v14 = vld [vmem:[%s2044_s3 + $0x78] sm:$0xff] }
 0x22a   : > { %v1034_v28 = vpop.f32.mrf.mxu0  ;;  %v1074_v29 = vpop.f32.mrf.mxu1  ;;  %v912_v15 = vld [vmem:[%s2044_s3 + $0xf8] sm:$0xff] }
 0x22b   : > { %v1035_v30 = vadd.f32 %v1034_v28, %v890_v20  ;;  %v1075_v31 = vadd.f32 %v1074_v29, %v906_v21  ;;  %v1450_v34 = vpack.c.bf16 %v1098_v26, %v1097_v24  ;;  %v1458_v35 = vpack.c.bf16 %v1114_v27, %v1113_v25 }
 0x22c   : > { %v1036_v36 = vpop.f32.mrf.mxu0  ;;  %v1076_v37 = vpop.f32.mrf.mxu1  ;;  %v1099_v38 = vmax.f32 %v1033_v22, 0.0  ;;  %v1115_v39 = vmax.f32 %v1073_v23, 0.0 }
 0x22d   : > { %v1100_v40 = vmax.f32 %v1035_v30, 0.0  ;;  %v1116_v41 = vmax.f32 %v1075_v31, 0.0  ;;  %1222 = vst [vmem:[%s1798_s7 + $0x18] sm:$0xff] %v1450_v34  ;;  %1230 = vst [vmem:[%s1798_s7 + $0x58] sm:$0xff] %v1458_v35  ;;  %v1037_v44 = vadd.f32 %v1036_v36, %v891_v32  ;;  %v1077_v45 = vadd.f32 %v1076_v37, %v907_v33 }
 0x22e   : > { %v1038_v46 = vpop.f32.mrf.mxu0  ;;  %v1078_v47 = vpop.f32.mrf.mxu1 }
 0x22f   : > { %v1451_v50 = vpack.c.bf16 %v1100_v40, %v1099_v38  ;;  %v1459_v51 = vpack.c.bf16 %v1116_v41, %v1115_v39  ;;  %v1039_v52 = vadd.f32 %v1038_v46, %v892_v42  ;;  %v1079_v53 = vadd.f32 %v1078_v47, %v908_v43 }
 0x230   : > { %v1042_v54 = vpop.f32.mrf.mxu0  ;;  %v1082_v55 = vpop.f32.mrf.mxu1  ;;  %v1101_v60 = vmax.f32 %v1037_v44, 0.0  ;;  %v1117_v61 = vmax.f32 %v1077_v45, 0.0 }
 0x231   : > { %1223 = vst [vmem:[%s1798_s7 + $0x20] sm:$0xff] %v1451_v50  ;;  %1231 = vst [vmem:[%s1798_s7 + $0x60] sm:$0xff] %v1459_v51  ;;  %v1043_v58 = vadd.f32 %v1042_v54, %v893_v48  ;;  %v1083_v59 = vadd.f32 %v1082_v55, %v909_v49  ;;  %v1102_v62 = vmax.f32 %v1039_v52, 0.0  ;;  %v1118_v63 = vmax.f32 %v1079_v53, 0.0 }
 0x232   : > { %v1044_v0 = vpop.f32.mrf.mxu0  ;;  %v1084_v1 = vpop.f32.mrf.mxu1 }
 0x233   : > { %v1045_v2 = vadd.f32 %v1044_v0, %v894_v56  ;;  %v1085_v3 = vadd.f32 %v1084_v1, %v910_v57  ;;  %v1452_v6 = vpack.c.bf16 %v1102_v62, %v1101_v60  ;;  %v1460_v7 = vpack.c.bf16 %v1118_v63, %v1117_v61 }
 0x234   : > { %v1046_v8 = vpop.f32.mrf.mxu0  ;;  %v1086_v9 = vpop.f32.mrf.mxu1  ;;  %v1103_v10 = vmax.f32 %v1043_v58, 0.0  ;;  %v1119_v11 = vmax.f32 %v1083_v59, 0.0 }
 0x235   : > { %v1104_v12 = vmax.f32 %v1045_v2, 0.0  ;;  %v1120_v13 = vmax.f32 %v1085_v3, 0.0  ;;  %1224 = vst [vmem:[%s1798_s7 + $0x28] sm:$0xff] %v1452_v6  ;;  %1232 = vst [vmem:[%s1798_s7 + $0x68] sm:$0xff] %v1460_v7  ;;  %v1047_v16 = vadd.f32 %v1046_v8, %v895_v4  ;;  %v1087_v17 = vadd.f32 %v1086_v9, %v911_v5 }
 0x236   : > { %v1048_v18 = vpop.f32.mrf.mxu0  ;;  %v1088_v19 = vpop.f32.mrf.mxu1 }
 0x237   : > { %v1453_v20 = vpack.c.bf16 %v1104_v12, %v1103_v10  ;;  %v1461_v21 = vpack.c.bf16 %v1120_v13, %v1119_v11  ;;  %v1049_v22 = vadd.f32 %v1048_v18, %v896_v14  ;;  %v1089_v23 = vadd.f32 %v1088_v19, %v912_v15 }
 0x238   : > { %v1105_v24 = vmax.f32 %v1047_v16, 0.0  ;;  %v1121_v25 = vmax.f32 %v1087_v17, 0.0 }
 0x239   : > { %1225 = vst [vmem:[%s1798_s7 + $0x30] sm:$0xff] %v1453_v20  ;;  %1233 = vst [vmem:[%s1798_s7 + $0x70] sm:$0xff] %v1461_v21  ;;  %v1106_v26 = vmax.f32 %v1049_v22, 0.0  ;;  %v1122_v27 = vmax.f32 %v1089_v23, 0.0 }
 0x23b   : > { %v1454_v28 = vpack.c.bf16 %v1106_v26, %v1105_v24  ;;  %v1462_v29 = vpack.c.bf16 %v1122_v27, %v1121_v25 }
 0x23d   : > { %1226 = vst [vmem:[%s1798_s7 + $0x38] sm:$0xff] %v1454_v28  ;;  %1234 = vst [vmem:[%s1798_s7 + $0x78] sm:$0xff] %v1462_v29 }
 0x23e PF: > { %s14_s21 = sadd.s32 1, %s1695_s21   ;;  %s2046_s15 = smov %s1675_s16 }
 0x23f   : > { %p11_p0 = scmp.ge.s32.totalorder %s14_s21, 18   ;;  %s2047_s16 = smov %s1775_s28 }
 0x240   : > { %s2048_s17 = smov %s1687_s19  ;;  %s2049_s18 = smov %s1691_s20 }
 0x241   : > { %s2050_s19 = smov %s2053_s22  ;;  %s2051_s20 = smov %s2057_s23 }
 0x242   :  { %13 = sbr.rel (!%p11_p0) target bundleno = 4 (0x4), region = 105 }

// kernel: feature_pyramid_forward.3
= control target key start
LH: loop header
LB: loop body
LE: loop exit
PB: predicated region body
PF: predicated region fallthrough
CT: control target
= control target key end

     0   :  { %s2015_s12 = smov 0   ;;  %s2017_s13 = smov 0   ;;  %s2502_s0 = inlined_call_operand.vmem [shape: bf16[2,32,4096], index: 0, kind: input, shape index: {}]   ;;  %s2503_s1 = inlined_call_operand.vmem [shape: bf16[2,128,256], index: 1, kind: input, shape index: {}]   ;;  %s2504_s2 = inlined_call_operand.vmem [shape: bf16[256,4096], index: 2, kind: input, shape index: {}]   ;;  %s2505_s3 = inlined_call_operand.vmem [shape: bf16[2,160,4096], index: 3, kind: output, shape index: {}]  }
   0x1   :  { %s2019_s14 = smov 0   ;;  %s2021_s15 = smov 0  }
   0x2   :  { %s2023_s16 = smov 0   ;;  %s2025_s17 = smov 0  }
   0x3   :  { %s2027_s18 = smov 0   ;;  %s2029_s19 = smov 0  }
   0x4   :  { %s2031_s20 = smov 0  }
   0x5 LB: > { %s1563_s21 = sadd.s32 4294967295, %s1993_s20   ;;  %s22_s22 = sadd.s32 1, %s1985_s18  ;;  %s1993_s20 = sphi %s2031_s20, %s13_s20   ;;  %s1989_s19 = sphi %s2029_s19, %s2516_s19   ;;  %s1985_s18 = sphi %s2027_s18, %s2515_s18   ;;  %s1981_s17 = sphi %s2025_s17, %s2514_s17   ;;  %s1977_s16 = sphi %s2023_s16, %s2513_s16   ;;  %s1973_s15 = sphi %s2021_s15, %s2512_s15   ;;  %s1969_s14 = sphi %s2019_s14, %s2511_s14   ;;  %s1965_s13 = sphi %s2017_s13, %s2510_s13   ;;  %s1961_s12 = sphi %s2015_s12, %s2509_s12  }
   0x6   : > { %p23_p0 = scmp.ge.s32.totalorder %s22_s22, 8  ;;  %s25_s23 = sadd.s32 1, %s1989_s19 }
   0x7   : > { %s34_s24 = sadd.s32 1, %s1973_s15  ;;  %p41_p1 = scmp.ne.s32.totalorder %s1973_s15, %s1969_s14 }
   0x8   : > { %s2518_s22 = smov (%p23_p0, %s22_s22), 0  ;;  %s2520_s23 = smov (!%p23_p0, %s25_s23), %s1989_s19 }
   0x9   : > { %s30_s25 = ssub.s32 %s1985_s18, %s2518_s22  ;;  %p42_p2 = scmp.eq.s32.totalorder %s1993_s20, 0 }
   0xa   : > { %p27_p3 = scmp.ge.s32.totalorder %s2520_s23, 2  ;;  %p84_p4 = scmp.eq.s32.totalorder %s30_s25, 0 }
   0xb   : > { %p2075_p5 = por %p42_p2, %p41_p1  ;;  %s86_s27 = sadd.s32 1, %s1965_s13 }
   0xc   : > { %s2522_s23 = smov (%p27_p3, %s2520_s23), 0  ;;  %p93_p6 = scmp.ne.s32.totalorder %s1965_s13, %s1961_s12 }
   0xd   : > { %s2083_s28 = scalar_select %p84_p4, %s1965_s13, %s86_s27  }
   0xe   : > { %s29_s29 = ssub.s32 %s1989_s19, %s2522_s23  ;;  %p125_p7 = scmp.eq.s32.totalorder %s1563_s21, 15 }
   0xf   : > { %s31_s30 = sor.u32 %s30_s25, %s29_s29  ;;  %p2089_p9 = por %p93_p6, %p42_p2 }
  0x10   : > { %p32_p8 = scmp.eq.s32.totalorder %s31_s30, 0  ;;  %p2096_p10 = por %p125_p7, %p41_p1 }
  0x11   : > { %p1566_p11 = scmp.ge.s32.totalorder %s1993_s20, 16 }
  0x12   : > { %s2101_s6 = scalar_select %p32_p8, %s1973_s15, %s34_s24  }
  0x13   : > { %147 = sbr.rel (%p1566_p11) target bundleno = 71 (0x47), region = 16 }
  0x18   : > { %150 = sbr.rel (!%p2075_p5) target bundleno = 35 (0x23), region = 20  ;;  %s152_s7 = sand.u32 (%p2075_p5), 1, %s1973_s15  }
  0x19   : > { %s1568_s8 = sshll.u32 (%p2075_p5), %s1985_s18, 2  ;;  %s1567_s9 = sshll.u32 (%p2075_p5), %s152_s7, 6 }
  0x1a   : > { %s1569_s10 = sshll.u32 (%p2075_p5), %s1989_s19, 7  ;;  %s154_s29 = scalar_lea.vmem (%p2075_p5), [#allocation2], %s1567_s9 }
  0x1b   : > { %s157_s11 = sadd.s32 (%p2075_p5), %s1569_s10, %s1568_s8 }
  0x1c   : > { %s1570_s21 = sshll.u32 (%p2075_p5), %s157_s11, 2 }
  0x1d   : > { %s159_s24 = scalar_lea.vmem %s2502_s0, %s1570_s21 }
  0x1e   : > { %v172_v0 = vld [vmem:[%s159_s24] sm:$0xff]  ;;  %v174_v1 = vld [vmem:[%s159_s24 + $0x8] sm:$0xff] }
  0x1f   : > { %v176_v2 = vld [vmem:[%s159_s24 + $0x80] sm:$0xff]  ;;  %173 = vst [vmem:[%s154_s29] sm:$0xff] %v172_v0  ;;  %175 = vst [vmem:[%s154_s29 + $0x8] sm:$0xff] %v174_v1  ;;  %v178_v3 = vld [vmem:[%s159_s24 + $0x88] sm:$0xff] }
  0x20   : > { %177 = vst [vmem:[%s154_s29 + $0x10] sm:$0xff] %v176_v2  ;;  %v180_v4 = vld [vmem:[%s159_s24 + $0x100] sm:$0xff]  ;;  %v182_v5 = vld [vmem:[%s159_s24 + $0x108] sm:$0xff]  ;;  %179 = vst [vmem:[%s154_s29 + $0x18] sm:$0xff] %v178_v3 }
  0x21   : > { %181 = vst [vmem:[%s154_s29 + $0x20] sm:$0xff] %v180_v4  ;;  %183 = vst [vmem:[%s154_s29 + $0x28] sm:$0xff] %v182_v5  ;;  %v184_v6 = vld [vmem:[%s159_s24 + $0x180] sm:$0xff]  ;;  %v186_v7 = vld [vmem:[%s159_s24 + $0x188] sm:$0xff] }
  0x22   : > { %185 = vst [vmem:[%s154_s29 + $0x30] sm:$0xff] %v184_v6  ;;  %187 = vst [vmem:[%s154_s29 + $0x38] sm:$0xff] %v186_v7 }
  0x23 PF: > { %201 = sbr.rel (!%p2089_p9) target bundleno = 71 (0x47), region = 47  ;;  %s203_s26 = sand.u32 (%p2089_p9), 1, %s1965_s13  }
  0x24   : > { %s1695_s30 = sshll.u32 (%p2089_p9), %s1985_s18, 4  ;;  %s1571_s7 = sshll.u32 (%p2089_p9), %s203_s26, 9 }
  0x25   : > { %s2119_s10 = scalar_lea.vmem (%p2089_p9), %s2504_s2, %s1695_s30  ;;  %s2124_s4 = scalar_lea.vmem (%p2089_p9), [#allocation3], %s1571_s7 }
  0x26   : > { %v221_v8 = vld [vmem:[%s2119_s10] sm:$0xff] (%p2089_p9)  ;;  %v223_v9 = vld [vmem:[%s2119_s10 + $0x8] sm:$0xff] (%p2089_p9) }
  0x27   : > { %v225_v10 = vld [vmem:[%s2119_s10 + $0x80] sm:$0xff] (%p2089_p9)  ;;  %222 = vst [vmem:[%s2124_s4] sm:$0xff] (%p2089_p9), %v221_v8  ;;  %224 = vst [vmem:[%s2124_s4 + $0x8] sm:$0xff] (%p2089_p9), %v223_v9  ;;  %v227_v11 = vld [vmem:[%s2119_s10 + $0x88] sm:$0xff] (%p2089_p9) }
  0x28   : > { %226 = vst [vmem:[%s2124_s4 + $0x10] sm:$0xff] %v225_v10  ;;  %v229_v12 = vld [vmem:[%s2119_s10 + $0x100] sm:$0xff]  ;;  %v231_v13 = vld [vmem:[%s2119_s10 + $0x108] sm:$0xff]  ;;  %228 = vst [vmem:[%s2124_s4 + $0x18] sm:$0xff] %v227_v11 }
  0x29   : > { %230 = vst [vmem:[%s2124_s4 + $0x20] sm:$0xff] %v229_v12  ;;  %232 = vst [vmem:[%s2124_s4 + $0x28] sm:$0xff] %v231_v13  ;;  %v233_v14 = vld [vmem:[%s2119_s10 + $0x180] sm:$0xff]  ;;  %v235_v15 = vld [vmem:[%s2119_s10 + $0x188] sm:$0xff] }
  0x2a   : > { %v237_v16 = vld [vmem:[%s2119_s10 + $0x200] sm:$0xff]  ;;  %234 = vst [vmem:[%s2124_s4 + $0x30] sm:$0xff] %v233_v14  ;;  %236 = vst [vmem:[%s2124_s4 + $0x38] sm:$0xff] %v235_v15  ;;  %v239_v17 = vld [vmem:[%s2119_s10 + $0x208] sm:$0xff] }
  0x2b   : > { %238 = vst [vmem:[%s2124_s4 + $0x40] sm:$0xff] %v237_v16  ;;  %v241_v18 = vld [vmem:[%s2119_s10 + $0x280] sm:$0xff]  ;;  %v243_v19 = vld [vmem:[%s2119_s10 + $0x288] sm:$0xff]  ;;  %240 = vst [vmem:[%s2124_s4 + $0x48] sm:$0xff] %v239_v17 }
  0x2c   : > { %242 = vst [vmem:[%s2124_s4 + $0x50] sm:$0xff] %v241_v18  ;;  %244 = vst [vmem:[%s2124_s4 + $0x58] sm:$0xff] %v243_v19  ;;  %v245_v20 = vld [vmem:[%s2119_s10 + $0x300] sm:$0xff]  ;;  %v247_v21 = vld [vmem:[%s2119_s10 + $0x308] sm:$0xff] }
  0x2d   : > { %v249_v22 = vld [vmem:[%s2119_s10 + $0x380] sm:$0xff]  ;;  %246 = vst [vmem:[%s2124_s4 + $0x60] sm:$0xff] %v245_v20  ;;  %248 = vst [vmem:[%s2124_s4 + $0x68] sm:$0xff] %v247_v21  ;;  %v251_v23 = vld [vmem:[%s2119_s10 + $0x388] sm:$0xff] }
  0x2e   : > { %250 = vst [vmem:[%s2124_s4 + $0x70] sm:$0xff] %v249_v22  ;;  %v253_v24 = vld [vmem:[%s2119_s10 + $0x400] sm:$0xff]  ;;  %v255_v25 = vld [vmem:[%s2119_s10 + $0x408] sm:$0xff]  ;;  %252 = vst [vmem:[%s2124_s4 + $0x78] sm:$0xff] %v251_v23 }
  0x2f   : > { %254 = vst [vmem:[%s2124_s4 + $0x80] sm:$0xff] %v253_v24  ;;  %256 = vst [vmem:[%s2124_s4 + $0x88] sm:$0xff] %v255_v25  ;;  %v257_v26 = vld [vmem:[%s2119_s10 + $0x480] sm:$0xff]  ;;  %v259_v27 = vld [vmem:[%s2119_s10 + $0x488] sm:$0xff] }
  0x30   : > { %v261_v28 = vld [vmem:[%s2119_s10 + $0x500] sm:$0xff]  ;;  %258 = vst [vmem:[%s2124_s4 + $0x90] sm:$0xff] %v257_v26  ;;  %260 = vst [vmem:[%s2124_s4 + $0x98] sm:$0xff] %v259_v27  ;;  %v263_v29 = vld [vmem:[%s2119_s10 + $0x508] sm:$0xff] }
  0x31   : > { %262 = vst [vmem:[%s2124_s4 + $0xa0] sm:$0xff] %v261_v28  ;;  %v265_v30 = vld [vmem:[%s2119_s10 + $0x580] sm:$0xff]  ;;  %v267_v31 = vld [vmem:[%s2119_s10 + $0x588] sm:$0xff]  ;;  %264 = vst [vmem:[%s2124_s4 + $0xa8] sm:$0xff] %v263_v29 }
  0x32   : > { %266 = vst [vmem:[%s2124_s4 + $0xb0] sm:$0xff] %v265_v30  ;;  %268 = vst [vmem:[%s2124_s4 + $0xb8] sm:$0xff] %v267_v31  ;;  %v269_v32 = vld [vmem:[%s2119_s10 + $0x600] sm:$0xff]  ;;  %v271_v33 = vld [vmem:[%s2119_s10 + $0x608] sm:$0xff] }
  0x33   : > { %v273_v34 = vld [vmem:[%s2119_s10 + $0x680] sm:$0xff]  ;;  %270 = vst [vmem:[%s2124_s4 + $0xc0] sm:$0xff] %v269_v32  ;;  %272 = vst [vmem:[%s2124_s4 + $0xc8] sm:$0xff] %v271_v33  ;;  %v275_v35 = vld [vmem:[%s2119_s10 + $0x688] sm:$0xff] }
  0x34   : > { %274 = vst [vmem:[%s2124_s4 + $0xd0] sm:$0xff] %v273_v34  ;;  %v277_v36 = vld [vmem:[%s2119_s10 + $0x700] sm:$0xff]  ;;  %v279_v37 = vld [vmem:[%s2119_s10 + $0x708] sm:$0xff]  ;;  %276 = vst [vmem:[%s2124_s4 + $0xd8] sm:$0xff] %v275_v35 }
  0x35   : > { %278 = vst [vmem:[%s2124_s4 + $0xe0] sm:$0xff] %v277_v36  ;;  %280 = vst [vmem:[%s2124_s4 + $0xe8] sm:$0xff] %v279_v37  ;;  %v281_v38 = vld [vmem:[%s2119_s10 + $0x780] sm:$0xff]  ;;  %v283_v39 = vld [vmem:[%s2119_s10 + $0x788] sm:$0xff] }
  0x36   : > { %v285_v40 = vld [vmem:[%s2119_s10 + $0x800] sm:$0xff]  ;;  %282 = vst [vmem:[%s2124_s4 + $0xf0] sm:$0xff] %v281_v38  ;;  %284 = vst [vmem:[%s2124_s4 + $0xf8] sm:$0xff] %v283_v39  ;;  %v287_v41 = vld [vmem:[%s2119_s10 + $0x808] sm:$0xff] }
  0x37   : > { %286 = vst [vmem:[%s2124_s4 + $0x100] sm:$0xff] %v285_v40  ;;  %v289_v42 = vld [vmem:[%s2119_s10 + $0x880] sm:$0xff]  ;;  %v291_v43 = vld [vmem:[%s2119_s10 + $0x888] sm:$0xff]  ;;  %288 = vst [vmem:[%s2124_s4 + $0x108] sm:$0xff] %v287_v41 }
  0x38   : > { %290 = vst [vmem:[%s2124_s4 + $0x110] sm:$0xff] %v289_v42  ;;  %292 = vst [vmem:[%s2124_s4 + $0x118] sm:$0xff] %v291_v43  ;;  %v293_v44 = vld [vmem:[%s2119_s10 + $0x900] sm:$0xff]  ;;  %v295_v45 = vld [vmem:[%s2119_s10 + $0x908] sm:$0xff] }
  0x39   : > { %v297_v46 = vld [vmem:[%s2119_s10 + $0x980] sm:$0xff]  ;;  %294 = vst [vmem:[%s2124_s4 + $0x120] sm:$0xff] %v293_v44  ;;  %296 = vst [vmem:[%s2124_s4 + $0x128] sm:$0xff] %v295_v45  ;;  %v299_v47 = vld [vmem:[%s2119_s10 + $0x988] sm:$0xff] }
  0x3a   : > { %298 = vst [vmem:[%s2124_s4 + $0x130] sm:$0xff] %v297_v46  ;;  %v301_v48 = vld [vmem:[%s2119_s10 + $0xa00] sm:$0xff]  ;;  %v303_v49 = vld [vmem:[%s2119_s10 + $0xa08] sm:$0xff]  ;;  %300 = vst [vmem:[%s2124_s4 + $0x138] sm:$0xff] %v299_v47 }
  0x3b   : > { %302 = vst [vmem:[%s2124_s4 + $0x140] sm:$0xff] %v301_v48  ;;  %304 = vst [vmem:[%s2124_s4 + $0x148] sm:$0xff] %v303_v49  ;;  %v305_v50 = vld [vmem:[%s2119_s10 + $0xa80] sm:$0xff]  ;;  %v307_v51 = vld [vmem:[%s2119_s10 + $0xa88] sm:$0xff] }
  0x3c   : > { %v309_v52 = vld [vmem:[%s2119_s10 + $0xb00] sm:$0xff]  ;;  %306 = vst [vmem:[%s2124_s4 + $0x150] sm:$0xff] %v305_v50  ;;  %308 = vst [vmem:[%s2124_s4 + $0x158] sm:$0xff] %v307_v51  ;;  %v311_v53 = vld [vmem:[%s2119_s10 + $0xb08] sm:$0xff] }
  0x3d   : > { %310 = vst [vmem:[%s2124_s4 + $0x160] sm:$0xff] %v309_v52  ;;  %v313_v54 = vld [vmem:[%s2119_s10 + $0xb80] sm:$0xff]  ;;  %v315_v55 = vld [vmem:[%s2119_s10 + $0xb88] sm:$0xff]  ;;  %312 = vst [vmem:[%s2124_s4 + $0x168] sm:$0xff] %v311_v53 }
  0x3e   : > { %314 = vst [vmem:[%s2124_s4 + $0x170] sm:$0xff] %v313_v54  ;;  %316 = vst [vmem:[%s2124_s4 + $0x178] sm:$0xff] %v315_v55  ;;  %v317_v56 = vld [vmem:[%s2119_s10 + $0xc00] sm:$0xff]  ;;  %v319_v57 = vld [vmem:[%s2119_s10 + $0xc08] sm:$0xff] }
  0x3f   : > { %v321_v58 = vld [vmem:[%s2119_s10 + $0xc80] sm:$0xff]  ;;  %318 = vst [vmem:[%s2124_s4 + $0x180] sm:$0xff] %v317_v56  ;;  %320 = vst [vmem:[%s2124_s4 + $0x188] sm:$0xff] %v319_v57  ;;  %v323_v59 = vld [vmem:[%s2119_s10 + $0xc88] sm:$0xff] }
  0x40   : > { %322 = vst [vmem:[%s2124_s4 + $0x190] sm:$0xff] %v321_v58  ;;  %v325_v60 = vld [vmem:[%s2119_s10 + $0xd00] sm:$0xff]  ;;  %v327_v61 = vld [vmem:[%s2119_s10 + $0xd08] sm:$0xff]  ;;  %324 = vst [vmem:[%s2124_s4 + $0x198] sm:$0xff] %v323_v59 }
  0x41   : > { %326 = vst [vmem:[%s2124_s4 + $0x1a0] sm:$0xff] %v325_v60  ;;  %328 = vst [vmem:[%s2124_s4 + $0x1a8] sm:$0xff] %v327_v61  ;;  %v329_v62 = vld [vmem:[%s2119_s10 + $0xd80] sm:$0xff]  ;;  %v331_v63 = vld [vmem:[%s2119_s10 + $0xd88] sm:$0xff] }
  0x42   : > { %v333_v0 = vld [vmem:[%s2119_s10 + $0xe00] sm:$0xff]  ;;  %330 = vst [vmem:[%s2124_s4 + $0x1b0] sm:$0xff] %v329_v62  ;;  %332 = vst [vmem:[%s2124_s4 + $0x1b8] sm:$0xff] %v331_v63  ;;  %v335_v1 = vld [vmem:[%s2119_s10 + $0xe08] sm:$0xff] }
  0x43   : > { %334 = vst [vmem:[%s2124_s4 + $0x1c0] sm:$0xff] %v333_v0  ;;  %v337_v2 = vld [vmem:[%s2119_s10 + $0xe80] sm:$0xff]  ;;  %v339_v3 = vld [vmem:[%s2119_s10 + $0xe88] sm:$0xff]  ;;  %336 = vst [vmem:[%s2124_s4 + $0x1c8] sm:$0xff] %v335_v1 }
  0x44   : > { %338 = vst [vmem:[%s2124_s4 + $0x1d0] sm:$0xff] %v337_v2  ;;  %340 = vst [vmem:[%s2124_s4 + $0x1d8] sm:$0xff] %v339_v3  ;;  %v341_v4 = vld [vmem:[%s2119_s10 + $0xf00] sm:$0xff]  ;;  %v343_v5 = vld [vmem:[%s2119_s10 + $0xf08] sm:$0xff] }
  0x45   : > { %v345_v6 = vld [vmem:[%s2119_s10 + $0xf80] sm:$0xff]  ;;  %342 = vst [vmem:[%s2124_s4 + $0x1e0] sm:$0xff] %v341_v4  ;;  %344 = vst [vmem:[%s2124_s4 + $0x1e8] sm:$0xff] %v343_v5  ;;  %v347_v7 = vld [vmem:[%s2119_s10 + $0xf88] sm:$0xff] }
  0x46   : > { %346 = vst [vmem:[%s2124_s4 + $0x1f0] sm:$0xff] %v345_v6  ;;  %348 = vst [vmem:[%s2124_s4 + $0x1f8] sm:$0xff] %v347_v7 }
  0x47 PF: > { %p1574_p12 = scmp.ge.s32.totalorder %s1993_s20, 1  ;;  %p353_p13 = scmp.lt.s32.totalorder %s1993_s20, 17 }
  0x49   : > { %p354_p0 = pnand %p1574_p12, %p353_p13 }
  0x4a   : > { %s367_s11 = sand.u32 (!%p354_p0), 1, %s1961_s12   ;;  %p399_p1 = scmp.lt.s32.totalorder (!%p354_p0), %s1981_s17, 1 }
  0x4b   : > { %357 = sbr.rel (%p354_p0) target bundleno = 411 (0x19b), region = 70  ;;  %s1576_s21 = sshll.u32 (!%p354_p0), %s367_s11, 9 }
  0x4c   : > { %s2254_s25 = scalar_lea.vmem (!%p354_p0), [#allocation3], %s1576_s21  ;;  %s360_s30 = sand.u32 (!%p354_p0), 1, %s1969_s14  }
  0x4d   : > { %s1575_s7 = sshll.u32 (!%p354_p0), %s360_s30, 6  ;;  %s1729_s8 = smul.u32 (!%p354_p0), 320, %s360_s30 }
  0x4e   : > { %s362_s9 = scalar_lea.vmem (!%p354_p0), [#allocation2], %s1575_s7 }
  0x4f   : > { %s2344_s10 = scalar_lea.vmem (!%p354_p0), [#allocation4], %s1729_s8 }
  0x50   : > { %v1803_v8 = vld [vmem:[%s2254_s25 + $0xe4] ss:$16 sps:$4 sm:$0xff]   ;;  %v1805_v9 = vld [vmem:[%s2254_s25 + $0xec] ss:$16 sps:$4 sm:$0xff]   ;;  %v1807_v10 = vld [vmem:[%s2254_s25 + $0xe0] ss:$16 sps:$4 sm:$0xff]  }
  0x51   : > { %886 = vmatprep.subr.bf16.mxu0 %v1803_v8  ;;  %v1808_v11 = vld [vmem:[%s2254_s25 + $0xe8] ss:$16 sps:$4 sm:$0xff]   ;;  %999 = vmatprep.subr.bf16.mxu1 %v1805_v9  ;;  %v1809_v12 = vld [vmem:[%s2254_s25 + $0xc4] ss:$16 sps:$4 sm:$0xff]   ;;  %v1811_v13 = vld [vmem:[%s2254_s25 + $0xcc] ss:$16 sps:$4 sm:$0xff]  }
  0x52   : > { %887 = vmatpush1.bf16.msra.mxu0 %v1807_v10  ;;  %1000 = vmatpush1.bf16.msra.mxu1 %v1808_v11  ;;  %v1813_v14 = vld [vmem:[%s2254_s25 + $0xc0] ss:$16 sps:$4 sm:$0xff]   ;;  %v1814_v15 = vld [vmem:[%s2254_s25 + $0xc8] ss:$16 sps:$4 sm:$0xff]   ;;  %v1815_v16 = vld [vmem:[%s2254_s25 + $0xa4] ss:$16 sps:$4 sm:$0xff]  }
  0x53   : > { %888 = vmatprep.subr.bf16.mxu0 %v1809_v12  ;;  %1001 = vmatprep.subr.bf16.mxu1 %v1811_v13  ;;  %v1817_v17 = vld [vmem:[%s2254_s25 + $0xac] ss:$16 sps:$4 sm:$0xff]   ;;  %v1819_v18 = vld [vmem:[%s2254_s25 + $0xa0] ss:$16 sps:$4 sm:$0xff]   ;;  %v1820_v19 = vld [vmem:[%s2254_s25 + $0xa8] ss:$16 sps:$4 sm:$0xff]  }
  0x54   : > { %v1821_v20 = vld [vmem:[%s2254_s25 + $0x84] ss:$16 sps:$4 sm:$0xff]   ;;  %v1823_v21 = vld [vmem:[%s2254_s25 + $0x8c] ss:$16 sps:$4 sm:$0xff]   ;;  %v1825_v22 = vld [vmem:[%s2254_s25 + $0x80] ss:$16 sps:$4 sm:$0xff]  }
  0x55   : > { %v1826_v23 = vld [vmem:[%s2254_s25 + $0x88] ss:$16 sps:$4 sm:$0xff]   ;;  %v1827_v24 = vld [vmem:[%s2254_s25 + $0x64] ss:$16 sps:$4 sm:$0xff]   ;;  %v1829_v25 = vld [vmem:[%s2254_s25 + $0x6c] ss:$16 sps:$4 sm:$0xff]  }
  0x56   : > { %889 = vmatpush1.bf16.msra.mxu0 %v1813_v14  ;;  %1002 = vmatpush1.bf16.msra.mxu1 %v1814_v15  ;;  %v1831_v26 = vld [vmem:[%s2254_s25 + $0x60] ss:$16 sps:$4 sm:$0xff]   ;;  %v1832_v27 = vld [vmem:[%s2254_s25 + $0x68] ss:$16 sps:$4 sm:$0xff]   ;;  %v1833_v28 = vld [vmem:[%s2254_s25 + $0x44] ss:$16 sps:$4 sm:$0xff]  }
  0x57   : > { %890 = vmatprep.subr.bf16.mxu0 %v1815_v16  ;;  %1003 = vmatprep.subr.bf16.mxu1 %v1817_v17  ;;  %v1835_v29 = vld [vmem:[%s2254_s25 + $0x4c] ss:$16 sps:$4 sm:$0xff]   ;;  %v1837_v30 = vld [vmem:[%s2254_s25 + $0x40] ss:$16 sps:$4 sm:$0xff]   ;;  %v1838_v31 = vld [vmem:[%s2254_s25 + $0x48] ss:$16 sps:$4 sm:$0xff]  }
  0x58   : > { %v1839_v32 = vld [vmem:[%s2254_s25 + $0x24] ss:$16 sps:$4 sm:$0xff]   ;;  %v1841_v33 = vld [vmem:[%s2254_s25 + $0x2c] ss:$16 sps:$4 sm:$0xff]   ;;  %v1843_v34 = vld [vmem:[%s2254_s25 + $0x20] ss:$16 sps:$4 sm:$0xff]  }
  0x59   : > { %v1844_v35 = vld [vmem:[%s2254_s25 + $0x28] ss:$16 sps:$4 sm:$0xff]   ;;  %v1845_v36 = vld [vmem:[%s2254_s25 + $0x4] ss:$16 sps:$4 sm:$0xff]   ;;  %v1847_v37 = vld [vmem:[%s2254_s25 + $0xc] ss:$16 sps:$4 sm:$0xff]  }
  0x5a   : > { %891 = vmatpush1.bf16.msra.mxu0 %v1819_v18  ;;  %1004 = vmatpush1.bf16.msra.mxu1 %v1820_v19  ;;  %v1849_v38 = vld [vmem:[%s2254_s25] ss:$16 sps:$4 sm:$0xff]   ;;  %v1850_v39 = vld [vmem:[%s2254_s25 + $0x8] ss:$16 sps:$4 sm:$0xff]   ;;  %v1851_v40 = vld [vmem:[%s2254_s25 + $0x1e4] ss:$16 sps:$4 sm:$0xff]  }
  0x5b   : > { %892 = vmatprep.subr.bf16.mxu0 %v1821_v20  ;;  %1005 = vmatprep.subr.bf16.mxu1 %v1823_v21  ;;  %v1853_v41 = vld [vmem:[%s2254_s25 + $0x1ec] ss:$16 sps:$4 sm:$0xff]   ;;  %v1855_v42 = vld [vmem:[%s2254_s25 + $0x1e0] ss:$16 sps:$4 sm:$0xff]   ;;  %v1856_v43 = vld [vmem:[%s2254_s25 + $0x1e8] ss:$16 sps:$4 sm:$0xff]  }
  0x5c   : > { %v1857_v44 = vld [vmem:[%s2254_s25 + $0x1c4] ss:$16 sps:$4 sm:$0xff]   ;;  %v1859_v45 = vld [vmem:[%s2254_s25 + $0x1cc] ss:$16 sps:$4 sm:$0xff]   ;;  %s400_s12 = scalar_select %p399_p1, %s1981_s17, 1 }
  0x5d   : > { %v1861_v46 = vld [vmem:[%s2254_s25 + $0x1c0] ss:$16 sps:$4 sm:$0xff]   ;;  %v1862_v47 = vld [vmem:[%s2254_s25 + $0x1c8] ss:$16 sps:$4 sm:$0xff]   ;;  %v1863_v48 = vld [vmem:[%s2254_s25 + $0x1a4] ss:$16 sps:$4 sm:$0xff]  }
  0x5e   : > { %893 = vmatpush1.bf16.msra.mxu0 %v1825_v22  ;;  %1006 = vmatpush1.bf16.msra.mxu1 %v1826_v23  ;;  %v1865_v49 = vld [vmem:[%s2254_s25 + $0x1ac] ss:$16 sps:$4 sm:$0xff]   ;;  %s1696_s27 = sshll.u32 %s400_s12, 7  ;;  %v1867_v50 = vld [vmem:[%s2254_s25 + $0x1a0] ss:$16 sps:$4 sm:$0xff]   ;;  %s1691_s14 = sshll.u32 (%p2096_p10), %s1977_s16, 2 }
  0x5f   : > { %894 = vmatprep.subr.bf16.mxu0 %v1827_v24  ;;  %1007 = vmatprep.subr.bf16.mxu1 %v1829_v25  ;;  %v1868_v51 = vld [vmem:[%s2254_s25 + $0x1a8] ss:$16 sps:$4 sm:$0xff]   ;;  %v1869_v52 = vld [vmem:[%s2254_s25 + $0x184] ss:$16 sps:$4 sm:$0xff]   ;;  %s2306_s26 = scalar_lea.vmem %s2503_s1, %s1696_s27  ;;  %v1871_v53 = vld [vmem:[%s2254_s25 + $0x18c] ss:$16 sps:$4 sm:$0xff]  }
  0x60   : > { %v1873_v54 = vld [vmem:[%s2254_s25 + $0x180] ss:$16 sps:$4 sm:$0xff]   ;;  %v1874_v55 = vld [vmem:[%s2254_s25 + $0x188] ss:$16 sps:$4 sm:$0xff]   ;;  %v1901_v56 = vld [vmem:[%s2306_s26 + $0x4] ss:$8 sps:$4 sm:$0xff]  }
  0x61   : > { %v1875_v57 = vld [vmem:[%s2254_s25 + $0x164] ss:$16 sps:$4 sm:$0xff]   ;;  %v1877_v58 = vld [vmem:[%s2254_s25 + $0x16c] ss:$16 sps:$4 sm:$0xff]   ;;  %918 = vmatprep.mubr.bf16.mxu0 %v1901_v56  ;;  %1031 = vmatprep.mubr.bf16.mxu1 %v1901_v56  ;;  %v1879_v59 = vld [vmem:[%s2254_s25 + $0x160] ss:$16 sps:$4 sm:$0xff]  }
  0x62   : > { %895 = vmatpush1.bf16.msra.mxu0 %v1831_v26  ;;  %1008 = vmatpush1.bf16.msra.mxu1 %v1832_v27  ;;  %v1880_v60 = vld [vmem:[%s2254_s25 + $0x168] ss:$16 sps:$4 sm:$0xff]   ;;  %v1881_v61 = vld [vmem:[%s2254_s25 + $0x144] ss:$16 sps:$4 sm:$0xff]   ;;  %v1883_v62 = vld [vmem:[%s2254_s25 + $0x14c] ss:$16 sps:$4 sm:$0xff]  }
  0x63   : > { %896 = vmatprep.subr.bf16.mxu0 %v1833_v28  ;;  %1009 = vmatprep.subr.bf16.mxu1 %v1835_v29  ;;  %v1885_v63 = vld [vmem:[%s2254_s25 + $0x140] ss:$16 sps:$4 sm:$0xff]   ;;  %v1886_v0 = vld [vmem:[%s2254_s25 + $0x148] ss:$16 sps:$4 sm:$0xff]   ;;  %v1887_v1 = vld [vmem:[%s2254_s25 + $0x124] ss:$16 sps:$4 sm:$0xff]  }
  0x64   : > { %v1889_v2 = vld [vmem:[%s2254_s25 + $0x12c] ss:$16 sps:$4 sm:$0xff]   ;;  %v1891_v3 = vld [vmem:[%s2254_s25 + $0x120] ss:$16 sps:$4 sm:$0xff]   ;;  %v1892_v4 = vld [vmem:[%s2254_s25 + $0x128] ss:$16 sps:$4 sm:$0xff]  }
  0x65   : > { %v1893_v5 = vld [vmem:[%s2254_s25 + $0x104] ss:$16 sps:$4 sm:$0xff]   ;;  %v1895_v6 = vld [vmem:[%s2254_s25 + $0x10c] ss:$16 sps:$4 sm:$0xff]   ;;  %v1897_v7 = vld [vmem:[%s2254_s25 + $0x100] ss:$16 sps:$4 sm:$0xff]  }
  0x66   : > { %897 = vmatpush1.bf16.msra.mxu0 %v1837_v30  ;;  %1010 = vmatpush1.bf16.msra.mxu1 %v1838_v31  ;;  %v1898_v8 = vld [vmem:[%s2254_s25 + $0x108] ss:$16 sps:$4 sm:$0xff]   ;;  %v1902_v10 = vld [vmem:[%s2306_s26 + $0x14] ss:$8 sps:$4 sm:$0xff]   ;;  %v1905_v12 = vld [vmem:[%s2306_s26 + $0x24] ss:$8 sps:$4 sm:$0xff]  }
  0x67   : > { %898 = vmatprep.subr.bf16.mxu0 %v1839_v32  ;;  %1011 = vmatprep.subr.bf16.mxu1 %v1841_v33  ;;  %v1899_v9 = vld [vmem:[%s2306_s26] ss:$8 sps:$4 sm:$0xff]   ;;  %v1904_v11 = vld [vmem:[%s2306_s26 + $0x10] ss:$8 sps:$4 sm:$0xff]   ;;  %v1908_v14 = vld [vmem:[%s2306_s26 + $0x34] ss:$8 sps:$4 sm:$0xff]  }
  0x68   : > { %v1907_v13 = vld [vmem:[%s2306_s26 + $0x20] ss:$8 sps:$4 sm:$0xff]   ;;  %v1910_v15 = vld [vmem:[%s2306_s26 + $0x30] ss:$8 sps:$4 sm:$0xff]   ;;  %v1911_v16 = vld [vmem:[%s2306_s26 + $0x44] ss:$8 sps:$4 sm:$0xff]  }
  0x69   : > { %v1913_v17 = vld [vmem:[%s2306_s26 + $0x40] ss:$8 sps:$4 sm:$0xff]   ;;  %v1914_v18 = vld [vmem:[%s2306_s26 + $0x54] ss:$8 sps:$4 sm:$0xff]   ;;  %v1916_v19 = vld [vmem:[%s2306_s26 + $0x50] ss:$8 sps:$4 sm:$0xff]  }
  0x6a   : > { %899 = vmatpush1.bf16.msra.mxu0 %v1843_v34  ;;  %1012 = vmatpush1.bf16.msra.mxu1 %v1844_v35  ;;  %v1917_v20 = vld [vmem:[%s2306_s26 + $0x64] ss:$8 sps:$4 sm:$0xff]   ;;  %v1919_v21 = vld [vmem:[%s2306_s26 + $0x60] ss:$8 sps:$4 sm:$0xff]   ;;  %v1920_v22 = vld [vmem:[%s2306_s26 + $0x74] ss:$8 sps:$4 sm:$0xff]  }
  0x6b   : > { %900 = vmatprep.subr.bf16.mxu0 %v1845_v36  ;;  %1013 = vmatprep.subr.bf16.mxu1 %v1847_v37  ;;  %v1922_v23 = vld [vmem:[%s2306_s26 + $0x70] ss:$8 sps:$4 sm:$0xff]   ;;  %v1112_v24 = vld [vmem:[%s362_s9] sm:$0xff]  ;;  %v1113_v25 = vld [vmem:[%s362_s9 + $0x8] sm:$0xff]  ;;  %s1730_s4 = smul.u32 (%p2096_p10), 640, %s1981_s17 }
  0x6c   : > { %v1114_v26 = vld [vmem:[%s362_s9 + $0x10] sm:$0xff]  ;;  %v1115_v27 = vld [vmem:[%s362_s9 + $0x18] sm:$0xff]  ;;  %v1116_v28 = vld [vmem:[%s362_s9 + $0x20] sm:$0xff]  ;;  %1120 = vst [vmem:[%s2344_s10] sm:$0xff] %v1112_v24 }
  0x6d   : > { %v1117_v29 = vld [vmem:[%s362_s9 + $0x28] sm:$0xff]  ;;  %1121 = vst [vmem:[%s2344_s10 + $0x8] sm:$0xff] %v1113_v25  ;;  %1122 = vst [vmem:[%s2344_s10 + $0x10] sm:$0xff] %v1114_v26  ;;  %v1118_v30 = vld [vmem:[%s362_s9 + $0x30] sm:$0xff]  ;;  %s1361_s5 = sadd.s32 (%p2096_p10), %s1730_s4, %s1691_s14 }
  0x6e   : > { %901 = vmatpush1.bf16.msra.mxu0 %v1849_v38  ;;  %1014 = vmatpush1.bf16.msra.mxu1 %v1850_v39  ;;  %v1119_v31 = vld [vmem:[%s362_s9 + $0x38] sm:$0xff]  ;;  %1123 = vst [vmem:[%s2344_s10 + $0x18] sm:$0xff] %v1115_v27  ;;  %1124 = vst [vmem:[%s2344_s10 + $0x20] sm:$0xff] %v1116_v28  ;;  %s1692_s11 = sshll.u32 (%p2096_p10), %s1361_s5, 2 }
  0x6f   : > { %902 = vmatprep.subr.bf16.mxu0 %v1851_v40  ;;  %1015 = vmatprep.subr.bf16.mxu1 %v1853_v41  ;;  %1125 = vst [vmem:[%s2344_s10 + $0x28] sm:$0xff] %v1117_v29  ;;  %1126 = vst [vmem:[%s2344_s10 + $0x30] sm:$0xff] %v1118_v30  ;;  %s2405_s17 = scalar_lea.vmem (%p2096_p10), %s2505_s3, %s1692_s11 }
  0x70   : > { %1127 = vst [vmem:[%s2344_s10 + $0x38] sm:$0xff] %v1119_v31 }
  0x72   : > { %903 = vmatpush2.bf16.msra.mxu0 %v1855_v42  ;;  %1016 = vmatpush2.bf16.msra.mxu1 %v1856_v43 }
  0x73   : > { %904 = vmatprep.subr.bf16.mxu0 %v1857_v44  ;;  %1017 = vmatprep.subr.bf16.mxu1 %v1859_v45 }
  0x76   : > { %905 = vmatpush2.bf16.msra.mxu0 %v1861_v46  ;;  %1018 = vmatpush2.bf16.msra.mxu1 %v1862_v47 }
  0x77   : > { %906 = vmatprep.subr.bf16.mxu0 %v1863_v48  ;;  %1019 = vmatprep.subr.bf16.mxu1 %v1865_v49 }
  0x7a   : > { %907 = vmatpush2.bf16.msra.mxu0 %v1867_v50  ;;  %1020 = vmatpush2.bf16.msra.mxu1 %v1868_v51 }
  0x7b   : > { %908 = vmatprep.subr.bf16.mxu0 %v1869_v52  ;;  %1021 = vmatprep.subr.bf16.mxu1 %v1871_v53 }
  0x7e   : > { %909 = vmatpush2.bf16.msra.mxu0 %v1873_v54  ;;  %1022 = vmatpush2.bf16.msra.mxu1 %v1874_v55 }
  0x7f   : > { %910 = vmatprep.subr.bf16.mxu0 %v1875_v57  ;;  %1023 = vmatprep.subr.bf16.mxu1 %v1877_v58 }
  0x82   : > { %911 = vmatpush2.bf16.msra.mxu0 %v1879_v59  ;;  %1024 = vmatpush2.bf16.msra.mxu1 %v1880_v60 }
  0x83   : > { %912 = vmatprep.subr.bf16.mxu0 %v1881_v61  ;;  %1025 = vmatprep.subr.bf16.mxu1 %v1883_v62 }
  0x86   : > { %913 = vmatpush2.bf16.msra.mxu0 %v1885_v63  ;;  %1026 = vmatpush2.bf16.msra.mxu1 %v1886_v0 }
  0x87   : > { %914 = vmatprep.subr.bf16.mxu0 %v1887_v1  ;;  %1027 = vmatprep.subr.bf16.mxu1 %v1889_v2 }
  0x8a   : > { %915 = vmatpush2.bf16.msra.mxu0 %v1891_v3  ;;  %1028 = vmatpush2.bf16.msra.mxu1 %v1892_v4 }
  0x8b   : > { %916 = vmatprep.subr.bf16.mxu0 %v1893_v5  ;;  %1029 = vmatprep.subr.bf16.mxu1 %v1895_v6 }
  0x8e   : > { %917 = vmatpush2.bf16.msra.mxu0 %v1897_v7  ;;  %1030 = vmatpush2.bf16.msra.mxu1 %v1898_v8 }
  0x91   : > { %919 = vmatmul.mubr.bf16.vlgmr.msra.gmra.mxu0 %v1899_v9  ;;  %1032 = vmatmul.mubr.bf16.vlgmr.msra.gmra.mxu1 %v1899_v9 }
  0x92   : > { %928 = vmatprep.mubr.bf16.mxu0 %v1902_v10  ;;  %1041 = vmatprep.mubr.bf16.mxu1 %v1902_v10 }
  0x99   : > { %929 = vmatmul.mubr.bf16.gmra.mxu0 %v1904_v11  ;;  %1042 = vmatmul.mubr.bf16.gmra.mxu1 %v1904_v11 }
  0x9a   : > { %938 = vmatprep.mubr.bf16.mxu0 %v1905_v12  ;;  %1051 = vmatprep.mubr.bf16.mxu1 %v1905_v12 }
  0xa1   : > { %939 = vmatmul.mubr.bf16.gmra.mxu0 %v1907_v13  ;;  %1052 = vmatmul.mubr.bf16.gmra.mxu1 %v1907_v13 }
  0xa2   : > { %948 = vmatprep.mubr.bf16.mxu0 %v1908_v14  ;;  %1061 = vmatprep.mubr.bf16.mxu1 %v1908_v14 }
  0xa9   : > { %949 = vmatmul.mubr.bf16.gmra.mxu0 %v1910_v15  ;;  %1062 = vmatmul.mubr.bf16.gmra.mxu1 %v1910_v15 }
  0xaa   : > { %958 = vmatprep.mubr.bf16.mxu0 %v1911_v16  ;;  %1071 = vmatprep.mubr.bf16.mxu1 %v1911_v16 }
  0xb1   : > { %959 = vmatmul.mubr.bf16.gmra.mxu0 %v1913_v17  ;;  %1072 = vmatmul.mubr.bf16.gmra.mxu1 %v1913_v17 }
  0xb2   : > { %968 = vmatprep.mubr.bf16.mxu0 %v1914_v18  ;;  %1081 = vmatprep.mubr.bf16.mxu1 %v1914_v18 }
  0xb9   : > { %969 = vmatmul.mubr.bf16.gmra.mxu0 %v1916_v19  ;;  %1082 = vmatmul.mubr.bf16.gmra.mxu1 %v1916_v19 }
  0xba   : > { %978 = vmatprep.mubr.bf16.mxu0 %v1917_v20  ;;  %1091 = vmatprep.mubr.bf16.mxu1 %v1917_v20 }
  0xc1   : > { %979 = vmatmul.mubr.bf16.gmra.mxu0 %v1919_v21  ;;  %1092 = vmatmul.mubr.bf16.gmra.mxu1 %v1919_v21 }
  0xc2   : > { %988 = vmatprep.mubr.bf16.mxu0 %v1920_v22  ;;  %1101 = vmatprep.mubr.bf16.mxu1 %v1920_v22 }
  0xc9   : > { %989 = vmatmul.mubr.bf16.gmra.mxu0 %v1922_v23  ;;  %1102 = vmatmul.mubr.bf16.gmra.mxu1 %v1922_v23 }
 0x151   : > { %v920_v32 = vpop.f32.mrf.mxu0  ;;  %v1033_v33 = vpop.f32.mrf.mxu1 }
 0x153   : > { %v922_v34 = vpop.f32.mrf.mxu0  ;;  %v1035_v35 = vpop.f32.mrf.mxu1 }
 0x154   : > { %v1697_v36 = vpack.c.bf16 %v922_v34, %v920_v32  ;;  %v1698_v37 = vpack.c.bf16 %v1035_v35, %v1033_v33 }
 0x155   : > { %v924_v38 = vpop.f32.mrf.mxu0  ;;  %v1037_v39 = vpop.f32.mrf.mxu1 }
 0x156   : > { %1320 = vst [vmem:[%s2344_s10 + $0x40] sm:$0xff] %v1697_v36  ;;  %1321 = vst [vmem:[%s2344_s10 + $0x48] sm:$0xff] %v1698_v37 }
 0x157   : > { %v926_v40 = vpop.f32.mrf.mxu0  ;;  %v1039_v41 = vpop.f32.mrf.mxu1 }
 0x158   : > { %v1699_v42 = vpack.c.bf16 %v926_v40, %v924_v38  ;;  %v1700_v43 = vpack.c.bf16 %v1039_v41, %v1037_v39 }
 0x159   : > { %v930_v44 = vpop.f32.mrf.mxu0  ;;  %v1043_v45 = vpop.f32.mrf.mxu1 }
 0x15a   : > { %1322 = vst [vmem:[%s2344_s10 + $0x50] sm:$0xff] %v1699_v42  ;;  %1323 = vst [vmem:[%s2344_s10 + $0x58] sm:$0xff] %v1700_v43 }
 0x15b   : > { %v932_v46 = vpop.f32.mrf.mxu0  ;;  %v1045_v47 = vpop.f32.mrf.mxu1 }
 0x15c   : > { %v1701_v48 = vpack.c.bf16 %v932_v46, %v930_v44  ;;  %v1702_v49 = vpack.c.bf16 %v1045_v47, %v1043_v45 }
 0x15d   : > { %v934_v50 = vpop.f32.mrf.mxu0  ;;  %v1047_v51 = vpop.f32.mrf.mxu1 }
 0x15e   : > { %1324 = vst [vmem:[%s2344_s10 + $0x60] sm:$0xff] %v1701_v48  ;;  %1325 = vst [vmem:[%s2344_s10 + $0x68] sm:$0xff] %v1702_v49 }
 0x15f   : > { %v936_v52 = vpop.f32.mrf.mxu0  ;;  %v1049_v53 = vpop.f32.mrf.mxu1 }
 0x160   : > { %v1703_v54 = vpack.c.bf16 %v936_v52, %v934_v50  ;;  %v1704_v55 = vpack.c.bf16 %v1049_v53, %v1047_v51 }
 0x161   : > { %v940_v56 = vpop.f32.mrf.mxu0  ;;  %v1053_v57 = vpop.f32.mrf.mxu1 }
 0x162   : > { %1326 = vst [vmem:[%s2344_s10 + $0x70] sm:$0xff] %v1703_v54  ;;  %1327 = vst [vmem:[%s2344_s10 + $0x78] sm:$0xff] %v1704_v55 }
 0x163   : > { %v942_v58 = vpop.f32.mrf.mxu0  ;;  %v1055_v59 = vpop.f32.mrf.mxu1 }
 0x164   : > { %v1705_v60 = vpack.c.bf16 %v942_v58, %v940_v56  ;;  %v1706_v61 = vpack.c.bf16 %v1055_v59, %v1053_v57 }
 0x165   : > { %v944_v62 = vpop.f32.mrf.mxu0  ;;  %v1057_v63 = vpop.f32.mrf.mxu1 }
 0x166   : > { %1328 = vst [vmem:[%s2344_s10 + $0x80] sm:$0xff] %v1705_v60  ;;  %1329 = vst [vmem:[%s2344_s10 + $0x88] sm:$0xff] %v1706_v61 }
 0x167   : > { %v946_v0 = vpop.f32.mrf.mxu0  ;;  %v1059_v1 = vpop.f32.mrf.mxu1 }
 0x168   : > { %v1707_v2 = vpack.c.bf16 %v946_v0, %v944_v62  ;;  %v1708_v3 = vpack.c.bf16 %v1059_v1, %v1057_v63  ;;  %v1376_v0 = vld [vmem:[%s2344_s10] sm:$0xff] (%p2096_p10)  ;;  %v1378_v1 = vld [vmem:[%s2344_s10 + $0x8] sm:$0xff] (%p2096_p10) }
 0x169   : > { %v950_v4 = vpop.f32.mrf.mxu0  ;;  %v1063_v5 = vpop.f32.mrf.mxu1  ;;  %1377 = vst [vmem:[%s2405_s17] sm:$0xff] (%p2096_p10), %v1376_v0  ;;  %1379 = vst [vmem:[%s2405_s17 + $0x8] sm:$0xff] (%p2096_p10), %v1378_v1 }
 0x16a   : > { %1330 = vst [vmem:[%s2344_s10 + $0x90] sm:$0xff] %v1707_v2  ;;  %1331 = vst [vmem:[%s2344_s10 + $0x98] sm:$0xff] %v1708_v3  ;;  %v1380_v2 = vld [vmem:[%s2344_s10 + $0x10] sm:$0xff] (%p2096_p10)  ;;  %v1382_v3 = vld [vmem:[%s2344_s10 + $0x18] sm:$0xff] (%p2096_p10) }
 0x16b   : > { %v952_v6 = vpop.f32.mrf.mxu0  ;;  %v1065_v7 = vpop.f32.mrf.mxu1  ;;  %1381 = vst [vmem:[%s2405_s17 + $0x80] sm:$0xff] (%p2096_p10), %v1380_v2  ;;  %1383 = vst [vmem:[%s2405_s17 + $0x88] sm:$0xff] (%p2096_p10), %v1382_v3 }
 0x16c   : > { %v1709_v8 = vpack.c.bf16 %v952_v6, %v950_v4  ;;  %v1710_v9 = vpack.c.bf16 %v1065_v7, %v1063_v5  ;;  %v1384_v4 = vld [vmem:[%s2344_s10 + $0x20] sm:$0xff] (%p2096_p10)  ;;  %v1386_v5 = vld [vmem:[%s2344_s10 + $0x28] sm:$0xff] (%p2096_p10)  ;;  %v1388_v6 = vld [vmem:[%s2344_s10 + $0x30] sm:$0xff] (%p2096_p10) }
 0x16d   : > { %v954_v10 = vpop.f32.mrf.mxu0  ;;  %v1067_v11 = vpop.f32.mrf.mxu1  ;;  %v1390_v7 = vld [vmem:[%s2344_s10 + $0x38] sm:$0xff] (%p2096_p10)  ;;  %1385 = vst [vmem:[%s2405_s17 + $0x100] sm:$0xff] (%p2096_p10), %v1384_v4  ;;  %1387 = vst [vmem:[%s2405_s17 + $0x108] sm:$0xff] (%p2096_p10), %v1386_v5 }
 0x16e   : > { %1332 = vst [vmem:[%s2344_s10 + $0xa0] sm:$0xff] %v1709_v8  ;;  %1333 = vst [vmem:[%s2344_s10 + $0xa8] sm:$0xff] %v1710_v9  ;;  %v1392_v8 = vld [vmem:[%s2344_s10 + $0x40] sm:$0xff] (%p2096_p10)  ;;  %v1394_v9 = vld [vmem:[%s2344_s10 + $0x48] sm:$0xff] (%p2096_p10) }
 0x16f   : > { %v956_v12 = vpop.f32.mrf.mxu0  ;;  %v1069_v13 = vpop.f32.mrf.mxu1  ;;  %1389 = vst [vmem:[%s2405_s17 + $0x180] sm:$0xff] (%p2096_p10), %v1388_v6  ;;  %1391 = vst [vmem:[%s2405_s17 + $0x188] sm:$0xff] (%p2096_p10), %v1390_v7 }
 0x170   : > { %v1711_v14 = vpack.c.bf16 %v956_v12, %v954_v10  ;;  %v1712_v15 = vpack.c.bf16 %v1069_v13, %v1067_v11  ;;  %v1396_v10 = vld [vmem:[%s2344_s10 + $0x50] sm:$0xff] (%p2096_p10)  ;;  %v1398_v11 = vld [vmem:[%s2344_s10 + $0x58] sm:$0xff] (%p2096_p10)  ;;  %v1400_v12 = vld [vmem:[%s2344_s10 + $0x60] sm:$0xff] (%p2096_p10)  ;;  %1393 = vst [vmem:[%s2405_s17 + $0x200] sm:$0xff] (%p2096_p10), %v1392_v8 }
 0x171   : > { %v960_v16 = vpop.f32.mrf.mxu0  ;;  %v1073_v17 = vpop.f32.mrf.mxu1  ;;  %v1402_v13 = vld [vmem:[%s2344_s10 + $0x68] sm:$0xff] (%p2096_p10)  ;;  %1395 = vst [vmem:[%s2405_s17 + $0x208] sm:$0xff] (%p2096_p10), %v1394_v9  ;;  %1397 = vst [vmem:[%s2405_s17 + $0x280] sm:$0xff] (%p2096_p10), %v1396_v10 }
 0x172   : > { %1334 = vst [vmem:[%s2344_s10 + $0xb0] sm:$0xff] %v1711_v14  ;;  %1335 = vst [vmem:[%s2344_s10 + $0xb8] sm:$0xff] %v1712_v15  ;;  %v1404_v14 = vld [vmem:[%s2344_s10 + $0x70] sm:$0xff] (%p2096_p10)  ;;  %v1406_v15 = vld [vmem:[%s2344_s10 + $0x78] sm:$0xff] (%p2096_p10) }
 0x173   : > { %v962_v18 = vpop.f32.mrf.mxu0  ;;  %v1075_v19 = vpop.f32.mrf.mxu1  ;;  %1399 = vst [vmem:[%s2405_s17 + $0x288] sm:$0xff] (%p2096_p10), %v1398_v11  ;;  %1401 = vst [vmem:[%s2405_s17 + $0x300] sm:$0xff] (%p2096_p10), %v1400_v12 }
 0x174   : > { %v1713_v20 = vpack.c.bf16 %v962_v18, %v960_v16  ;;  %v1714_v21 = vpack.c.bf16 %v1075_v19, %v1073_v17  ;;  %1403 = vst [vmem:[%s2405_s17 + $0x308] sm:$0xff] (%p2096_p10), %v1402_v13  ;;  %1405 = vst [vmem:[%s2405_s17 + $0x380] sm:$0xff] (%p2096_p10), %v1404_v14  ;;  %v1408_v16 = vld [vmem:[%s2344_s10 + $0x80] sm:$0xff] (%p2096_p10)  ;;  %v1410_v17 = vld [vmem:[%s2344_s10 + $0x88] sm:$0xff] (%p2096_p10) }
 0x175   : > { %v964_v22 = vpop.f32.mrf.mxu0  ;;  %v1077_v23 = vpop.f32.mrf.mxu1  ;;  %1407 = vst [vmem:[%s2405_s17 + $0x388] sm:$0xff] (%p2096_p10), %v1406_v15  ;;  %1409 = vst [vmem:[%s2405_s17 + $0x400] sm:$0xff] (%p2096_p10), %v1408_v16  ;;  %v1412_v18 = vld [vmem:[%s2344_s10 + $0x90] sm:$0xff] (%p2096_p10)  ;;  %v1414_v19 = vld [vmem:[%s2344_s10 + $0x98] sm:$0xff] (%p2096_p10) }
 0x176   : > { %1336 = vst [vmem:[%s2344_s10 + $0xc0] sm:$0xff] %v1713_v20  ;;  %1337 = vst [vmem:[%s2344_s10 + $0xc8] sm:$0xff] %v1714_v21  ;;  %v1416_v20 = vld [vmem:[%s2344_s10 + $0xa0] sm:$0xff] (%p2096_p10)  ;;  %v1418_v21 = vld [vmem:[%s2344_s10 + $0xa8] sm:$0xff] (%p2096_p10) }
 0x177   : > { %v966_v24 = vpop.f32.mrf.mxu0  ;;  %v1079_v25 = vpop.f32.mrf.mxu1  ;;  %1411 = vst [vmem:[%s2405_s17 + $0x408] sm:$0xff] (%p2096_p10), %v1410_v17  ;;  %1413 = vst [vmem:[%s2405_s17 + $0x480] sm:$0xff] (%p2096_p10), %v1412_v18 }
 0x178   : > { %v1715_v26 = vpack.c.bf16 %v966_v24, %v964_v22  ;;  %v1716_v27 = vpack.c.bf16 %v1079_v25, %v1077_v23  ;;  %1415 = vst [vmem:[%s2405_s17 + $0x488] sm:$0xff] (%p2096_p10), %v1414_v19  ;;  %1417 = vst [vmem:[%s2405_s17 + $0x500] sm:$0xff] (%p2096_p10), %v1416_v20 }
 0x179   : > { %v970_v28 = vpop.f32.mrf.mxu0  ;;  %v1083_v29 = vpop.f32.mrf.mxu1  ;;  %v1420_v22 = vld [vmem:[%s2344_s10 + $0xb0] sm:$0xff] (%p2096_p10)  ;;  %v1422_v23 = vld [vmem:[%s2344_s10 + $0xb8] sm:$0xff] (%p2096_p10)  ;;  %1419 = vst [vmem:[%s2405_s17 + $0x508] sm:$0xff] (%p2096_p10), %v1418_v21 }
 0x17a   : > { %1338 = vst [vmem:[%s2344_s10 + $0xd0] sm:$0xff] %v1715_v26  ;;  %1339 = vst [vmem:[%s2344_s10 + $0xd8] sm:$0xff] %v1716_v27 }
 0x17b   : > { %v972_v30 = vpop.f32.mrf.mxu0  ;;  %v1085_v31 = vpop.f32.mrf.mxu1  ;;  %1421 = vst [vmem:[%s2405_s17 + $0x580] sm:$0xff] (%p2096_p10), %v1420_v22  ;;  %1423 = vst [vmem:[%s2405_s17 + $0x588] sm:$0xff] (%p2096_p10), %v1422_v23 }
 0x17c   : > { %v1717_v32 = vpack.c.bf16 %v972_v30, %v970_v28  ;;  %v1718_v33 = vpack.c.bf16 %v1085_v31, %v1083_v29 }
 0x17d   : > { %v974_v34 = vpop.f32.mrf.mxu0  ;;  %v1087_v35 = vpop.f32.mrf.mxu1  ;;  %v1424_v24 = vld [vmem:[%s2344_s10 + $0xc0] sm:$0xff] (%p2096_p10)  ;;  %v1426_v25 = vld [vmem:[%s2344_s10 + $0xc8] sm:$0xff] (%p2096_p10) }
 0x17e   : > { %1340 = vst [vmem:[%s2344_s10 + $0xe0] sm:$0xff] %v1717_v32  ;;  %1341 = vst [vmem:[%s2344_s10 + $0xe8] sm:$0xff] %v1718_v33 }
 0x17f   : > { %v976_v36 = vpop.f32.mrf.mxu0  ;;  %v1089_v37 = vpop.f32.mrf.mxu1  ;;  %1425 = vst [vmem:[%s2405_s17 + $0x600] sm:$0xff] (%p2096_p10), %v1424_v24  ;;  %1427 = vst [vmem:[%s2405_s17 + $0x608] sm:$0xff] (%p2096_p10), %v1426_v25 }
 0x180   : > { %v1719_v38 = vpack.c.bf16 %v976_v36, %v974_v34  ;;  %v1720_v39 = vpack.c.bf16 %v1089_v37, %v1087_v35 }
 0x181   : > { %v980_v40 = vpop.f32.mrf.mxu0  ;;  %v1093_v41 = vpop.f32.mrf.mxu1  ;;  %v1428_v26 = vld [vmem:[%s2344_s10 + $0xd0] sm:$0xff] (%p2096_p10)  ;;  %v1430_v27 = vld [vmem:[%s2344_s10 + $0xd8] sm:$0xff] (%p2096_p10) }
 0x182   : > { %1342 = vst [vmem:[%s2344_s10 + $0xf0] sm:$0xff] %v1719_v38  ;;  %1343 = vst [vmem:[%s2344_s10 + $0xf8] sm:$0xff] %v1720_v39 }
 0x183   : > { %v982_v42 = vpop.f32.mrf.mxu0  ;;  %v1095_v43 = vpop.f32.mrf.mxu1  ;;  %1429 = vst [vmem:[%s2405_s17 + $0x680] sm:$0xff] (%p2096_p10), %v1428_v26  ;;  %1431 = vst [vmem:[%s2405_s17 + $0x688] sm:$0xff] (%p2096_p10), %v1430_v27 }
 0x184   : > { %v1721_v44 = vpack.c.bf16 %v982_v42, %v980_v40  ;;  %v1722_v45 = vpack.c.bf16 %v1095_v43, %v1093_v41 }
 0x185   : > { %v984_v46 = vpop.f32.mrf.mxu0  ;;  %v1097_v47 = vpop.f32.mrf.mxu1  ;;  %v1432_v28 = vld [vmem:[%s2344_s10 + $0xe0] sm:$0xff] (%p2096_p10)  ;;  %v1434_v29 = vld [vmem:[%s2344_s10 + $0xe8] sm:$0xff] (%p2096_p10) }
 0x186   : > { %1344 = vst [vmem:[%s2344_s10 + $0x100] sm:$0xff] %v1721_v44  ;;  %1345 = vst [vmem:[%s2344_s10 + $0x108] sm:$0xff] %v1722_v45 }
 0x187   : > { %v986_v48 = vpop.f32.mrf.mxu0  ;;  %v1099_v49 = vpop.f32.mrf.mxu1  ;;  %1433 = vst [vmem:[%s2405_s17 + $0x700] sm:$0xff] (%p2096_p10), %v1432_v28  ;;  %1435 = vst [vmem:[%s2405_s17 + $0x708] sm:$0xff] (%p2096_p10), %v1434_v29 }
 0x188   : > { %v1723_v50 = vpack.c.bf16 %v986_v48, %v984_v46  ;;  %v1724_v51 = vpack.c.bf16 %v1099_v49, %v1097_v47 }
 0x189   : > { %v990_v52 = vpop.f32.mrf.mxu0  ;;  %v1103_v53 = vpop.f32.mrf.mxu1  ;;  %v1436_v30 = vld [vmem:[%s2344_s10 + $0xf0] sm:$0xff] (%p2096_p10)  ;;  %v1438_v31 = vld [vmem:[%s2344_s10 + $0xf8] sm:$0xff] (%p2096_p10) }
 0x18a   : > { %1346 = vst [vmem:[%s2344_s10 + $0x110] sm:$0xff] %v1723_v50  ;;  %1347 = vst [vmem:[%s2344_s10 + $0x118] sm:$0xff] %v1724_v51 }
 0x18b   : > { %v992_v54 = vpop.f32.mrf.mxu0  ;;  %v1105_v55 = vpop.f32.mrf.mxu1  ;;  %1437 = vst [vmem:[%s2405_s17 + $0x780] sm:$0xff] (%p2096_p10), %v1436_v30  ;;  %1439 = vst [vmem:[%s2405_s17 + $0x788] sm:$0xff] (%p2096_p10), %v1438_v31 }
 0x18c   : > { %v1725_v56 = vpack.c.bf16 %v992_v54, %v990_v52  ;;  %v1726_v57 = vpack.c.bf16 %v1105_v55, %v1103_v53 }
 0x18d   : > { %v994_v58 = vpop.f32.mrf.mxu0  ;;  %v1107_v59 = vpop.f32.mrf.mxu1  ;;  %v1440_v32 = vld [vmem:[%s2344_s10 + $0x100] sm:$0xff] (%p2096_p10)  ;;  %v1442_v33 = vld [vmem:[%s2344_s10 + $0x108] sm:$0xff] (%p2096_p10) }
 0x18e   : > { %1348 = vst [vmem:[%s2344_s10 + $0x120] sm:$0xff] %v1725_v56  ;;  %1349 = vst [vmem:[%s2344_s10 + $0x128] sm:$0xff] %v1726_v57  ;;  %1358 = sbr.rel (!%p2096_p10) target bundleno = 411 (0x19b), region = 82 }
 0x18f   : > { %v996_v60 = vpop.f32.mrf.mxu0  ;;  %v1109_v61 = vpop.f32.mrf.mxu1  ;;  %1441 = vst [vmem:[%s2405_s17 + $0x800] sm:$0xff] (%p2096_p10), %v1440_v32  ;;  %1443 = vst [vmem:[%s2405_s17 + $0x808] sm:$0xff] (%p2096_p10), %v1442_v33 }
 0x190   : > { %v1727_v62 = vpack.c.bf16 %v996_v60, %v994_v58  ;;  %v1728_v63 = vpack.c.bf16 %v1109_v61, %v1107_v59 }
 0x191   : > { %v1444_v34 = vld [vmem:[%s2344_s10 + $0x110] sm:$0xff] (%p2096_p10)  ;;  %v1446_v35 = vld [vmem:[%s2344_s10 + $0x118] sm:$0xff] (%p2096_p10) }
 0x192   : > { %1350 = vst [vmem:[%s2344_s10 + $0x130] sm:$0xff] %v1727_v62  ;;  %1351 = vst [vmem:[%s2344_s10 + $0x138] sm:$0xff] %v1728_v63 }
 0x193   : > { %1445 = vst [vmem:[%s2405_s17 + $0x880] sm:$0xff] %v1444_v34  ;;  %1447 = vst [vmem:[%s2405_s17 + $0x888] sm:$0xff] %v1446_v35 }
 0x195   : > { %v1448_v36 = vld [vmem:[%s2344_s10 + $0x120] sm:$0xff]  ;;  %v1450_v37 = vld [vmem:[%s2344_s10 + $0x128] sm:$0xff] }
 0x196   : > { %1449 = vst [vmem:[%s2405_s17 + $0x900] sm:$0xff] %v1448_v36  ;;  %1451 = vst [vmem:[%s2405_s17 + $0x908] sm:$0xff] %v1450_v37 }
 0x199   : > { %v1452_v38 = vld [vmem:[%s2344_s10 + $0x130] sm:$0xff]  ;;  %v1454_v39 = vld [vmem:[%s2344_s10 + $0x138] sm:$0xff] }
 0x19a   : > { %1453 = vst [vmem:[%s2405_s17 + $0x980] sm:$0xff] %v1452_v38  ;;  %1455 = vst [vmem:[%s2405_s17 + $0x988] sm:$0xff] %v1454_v39 }
 0x19b PF: > { %s13_s20 = sadd.s32 1, %s1993_s20   ;;  %s2509_s12 = smov %s1965_s13 }
 0x19c   : > { %p10_p2 = scmp.ge.s32.totalorder %s13_s20, 18   ;;  %s2510_s13 = smov %s2083_s28 }
 0x19d   : > { %s2511_s14 = smov %s1973_s15  ;;  %s2512_s15 = smov %s2101_s6 }
 0x19e   : > { %s2513_s16 = smov %s1985_s18  ;;  %s2514_s17 = smov %s1989_s19 }
 0x19f   : > { %s2515_s18 = smov %s2518_s22  ;;  %s2516_s19 = smov %s2522_s23 }
 0x1a0   :  { %12 = sbr.rel (!%p10_p2) target bundleno = 5 (0x5), region = 147 }

</bundles_post_ra>
